<compile_context>
chip_gen: v5e
topology: v5e:2x2
jax: 0.10.0
libtpu: 0.0.40
codegen_flags: <defaults>
</compile_context>

<pallas_src>
import functools
import math

import jax
import jax.numpy as jnp
from jax.experimental import pallas as pl
from jax.experimental.pallas import tpu as pltpu


_BF16 = jnp.bfloat16
_GELU_C = math.sqrt(2.0 / math.pi)
_GELU_C3 = _GELU_C * 0.044715


# ----------------------------------------------------------------------------
# Pallas kernels
# ----------------------------------------------------------------------------

def _make_embed_ln_kernel(eps):
    """out = LayerNorm(word + pos + tok) * gamma + beta, stored bf16."""
    def kernel(we_ref, pe_ref, te_ref, g_ref, b_ref, o_ref):
        x = we_ref[...] + pe_ref[...] + te_ref[...]          # f32 sum, fused
        mean = jnp.mean(x, axis=-1, keepdims=True)
        xc = x - mean
        var = jnp.mean(xc * xc, axis=-1, keepdims=True)
        y = xc * jax.lax.rsqrt(var + eps) * g_ref[...] + b_ref[...]
        o_ref[...] = y.astype(o_ref.dtype)
    return kernel


def embed_layernorm(word_e, pos_e, tok_e, gamma, beta, eps):
    """word_e/tok_e: [B,S,H] f32, pos_e: [1,S,H] f32 -> [B,S,H] bf16."""
    B, S, H = word_e.shape
    return pl.pallas_call(
        _make_embed_ln_kernel(eps),
        out_shape=jax.ShapeDtypeStruct((B, S, H), _BF16),
        in_specs=[
            pl.BlockSpec((B, S, H), lambda: (0, 0, 0)),
            pl.BlockSpec((1, S, H), lambda: (0, 0, 0)),
            pl.BlockSpec((B, S, H), lambda: (0, 0, 0)),
            pl.BlockSpec((1, 1, H), lambda: (0, 0, 0)),
            pl.BlockSpec((1, 1, H), lambda: (0, 0, 0)),
        ],
        out_specs=pl.BlockSpec((B, S, H), lambda: (0, 0, 0)),
    )(word_e, pos_e, tok_e, gamma, beta)


def _make_layer_kernel(Bt, S, nH, d, eps):
    """One full BigBird encoder layer for a block of Bt batch elements."""
    H = nH * d

    def layer_norm(y, g, b):
        mean = jnp.mean(y, axis=-1, keepdims=True)
        yc = y - mean
        var = jnp.mean(yc * yc, axis=-1, keepdims=True)
        return yc * jax.lax.rsqrt(var + eps) * g + b

    def kernel(h_ref, mask_ref,
               wqkv_ref, bqkv_ref, wo_ref, bo_ref, ln1g_ref, ln1b_ref,
               wi_ref, bi_ref, wo2_ref, bo2_ref, ln2g_ref, ln2b_ref,
               o_ref, p_ref):
        # [Bt, S, H] bf16 -> [Bt*S, H]: all Bt*S rows feed the MXU in one dot.
        x = h_ref[...].reshape(Bt * S, H)
        xf = x.astype(jnp.float32)

        # Fused QKV projection (bf16 MXU, f32 accumulate).  The 1/sqrt(d)
        # scale is already folded into the q columns of wqkv / bqkv.
        qkv = jnp.dot(x, wqkv_ref[...],
                      preferred_element_type=jnp.float32) + bqkv_ref[...]

        wo = wo_ref[...]                                     # (H, H) bf16
        rows = []
        for bb in range(Bt):                                 # static & small
            mask_b = mask_ref[bb]                            # (1, S) additive
            r0 = bb * S
            out_b = None
            for hh in range(nH):                             # static & small
                c0 = hh * d
                q = qkv[r0:r0 + S, c0:c0 + d]
                k = qkv[r0:r0 + S, H + c0:H + c0 + d]
                v = qkv[r0:r0 + S, 2 * H + c0:2 * H + c0 + d]

                s = jax.lax.dot_general(
                    q.astype(_BF16), k.astype(_BF16),
                    dimension_numbers=(((1,), (1,)), ((), ())),
                    preferred_element_type=jnp.float32)
                s = s + mask_b                               # broadcast over q
                mmax = jnp.max(s, axis=-1, keepdims=True)
                e = jnp.exp(s - mmax)
                denom = jnp.sum(e, axis=-1, keepdims=True)
                probs = e / denom                            # exact: rows sum to 1
                p_ref[bb, hh, :, :] = probs.astype(p_ref.dtype)

                ctx = jnp.dot(probs.astype(_BF16), v.astype(_BF16),
                              preferred_element_type=jnp.float32)
                # Accumulate straight into the output projection: per-head
                # ctx @ wo[h*d:(h+1)*d, :] replaces the lane concat entirely.
                contrib = jnp.dot(ctx.astype(_BF16), wo[c0:c0 + d, :],
                                  preferred_element_type=jnp.float32)
                out_b = contrib if out_b is None else out_b + contrib
            rows.append(out_b)
        attn = rows[0] if Bt == 1 else jnp.concatenate(rows, axis=0)

        # --- attention output bias + residual + LayerNorm (f32 math) ---
        y = attn + bo_ref[...] + xf
        h1 = layer_norm(y, ln1g_ref[...], ln1b_ref[...])

        # --- feed-forward (gelu_new) + residual + LayerNorm ---
        inter = jnp.dot(h1.astype(_BF16), wi_ref[...],
                        preferred_element_type=jnp.float32) + bi_ref[...]
        inner = inter * (_GELU_C + _GELU_C3 * (inter * inter))
        act = 0.5 * inter * (1.0 + jnp.tanh(inner))
        ffn = jnp.dot(act.astype(_BF16), wo2_ref[...],
                      preferred_element_type=jnp.float32) + bo2_ref[...]
        out = layer_norm(ffn + h1, ln2g_ref[...], ln2b_ref[...])
        o_ref[...] = out.reshape(Bt, S, H).astype(o_ref.dtype)

    return kernel


def _batch_tile(B, S, target_rows=256):
    """Largest divisor of B so that Bt*S approaches target_rows of MXU M."""
    bt = max(1, min(B, target_rows // max(S, 1)))
    while B % bt:
        bt -= 1
    return bt


def encoder_layer(h, mask_add, lp, cfg):
    """h: [B,S,H] bf16, mask_add: [B,1,S] f32 additive mask.

    Returns (h_out [B,S,H] bf16, attention_probs [B,nH,S,S] bf16).
    """
    B, S, H = h.shape
    nH = cfg.num_attention_heads
    d = H // nH
    I = cfg.intermediate_size
    Bt = _batch_tile(B, S)

    flops = int(2 * B * S * H * (3 * H) + 4 * B * S * S * H
                + 2 * B * S * H * H + 4 * B * S * H * I)
    transcendentals = int(B * nH * S * S + B * S * I)
    bytes_accessed = int(4 * B * S * H + 2 * B * nH * S * S
                         + 2 * (3 * H * H + H * H + 2 * H * I)
                         + 4 * (B * S + 3 * H + 7 * H + I))

    return pl.pallas_call(
        _make_layer_kernel(Bt, S, nH, d, cfg.layer_norm_eps),
        out_shape=(
            jax.ShapeDtypeStruct((B, S, H), _BF16),
            jax.ShapeDtypeStruct((B, nH, S, S), _BF16),
        ),
        grid=(B // Bt,),
        in_specs=[
            pl.BlockSpec((Bt, S, H), lambda b: (b, 0, 0)),       # h (bf16)
            pl.BlockSpec((Bt, 1, S), lambda b: (b, 0, 0)),       # additive mask
            pl.BlockSpec((H, 3 * H), lambda b: (0, 0)),          # wqkv (bf16)
            pl.BlockSpec((1, 3 * H), lambda b: (0, 0)),          # bqkv
            pl.BlockSpec((H, H), lambda b: (0, 0)),              # wo (bf16)
            pl.BlockSpec((1, H), lambda b: (0, 0)),              # bo
            pl.BlockSpec((1, H), lambda b: (0, 0)),              # ln1 gamma
            pl.BlockSpec((1, H), lambda b: (0, 0)),              # ln1 beta
            pl.BlockSpec((H, I), lambda b: (0, 0)),              # wi (bf16)
            pl.BlockSpec((1, I), lambda b: (0, 0)),              # bi
            pl.BlockSpec((I, H), lambda b: (0, 0)),              # wo2 (bf16)
            pl.BlockSpec((1, H), lambda b: (0, 0)),              # bo2
            pl.BlockSpec((1, H), lambda b: (0, 0)),              # ln2 gamma
            pl.BlockSpec((1, H), lambda b: (0, 0)),              # ln2 beta
        ],
        out_specs=(
            pl.BlockSpec((Bt, S, H), lambda b: (b, 0, 0)),
            pl.BlockSpec((Bt, nH, S, S), lambda b: (b, 0, 0, 0)),
        ),
        compiler_params=pltpu.CompilerParams(
            dimension_semantics=("parallel",),
            vmem_limit_bytes=32 * 1024 * 1024),
        cost_estimate=pl.CostEstimate(
            flops=flops, transcendentals=transcendentals,
            bytes_accessed=bytes_accessed),
    )(h, mask_add, lp["wqkv"], lp["bqkv"], lp["wo"], lp["bo"],
      lp["ln1g"], lp["ln1b"], lp["wi"], lp["bi"], lp["wo2"], lp["bo2"],
      lp["ln2g"], lp["ln2b"])


def _head_kernel(cls_ref, wp_ref, bp_ref, wfc_ref, bfc_ref, o_ref):
    """Fused pooler (tanh) + classifier: logits = tanh(cls@Wp+bp) @ Wfc + bfc."""
    pooled = jnp.tanh(
        jnp.dot(cls_ref[...], wp_ref[...],
                preferred_element_type=jnp.float32) + bp_ref[...])
    # classifier dropout (p=0.3) in eval mode => identity
    o_ref[...] = jnp.dot(pooled.astype(_BF16), wfc_ref[...],
                         preferred_element_type=jnp.float32) + bfc_ref[...]


def pooler_classifier(cls, wp, bp, wfc, bfc):
    """cls: [B,H] bf16; wp: [H,H] bf16; wfc: [H,C] bf16 -> logits [B,C] f32."""
    B, H = cls.shape
    C = wfc.shape[1]
    return pl.pallas_call(
        _head_kernel,
        out_shape=jax.ShapeDtypeStruct((B, C), jnp.float32),
        in_specs=[
            pl.BlockSpec((B, H), lambda: (0, 0)),
            pl.BlockSpec((H, H), lambda: (0, 0)),
            pl.BlockSpec((1, H), lambda: (0, 0)),
            pl.BlockSpec((H, C), lambda: (0, 0)),
            pl.BlockSpec((1, C), lambda: (0, 0)),
        ],
        out_specs=pl.BlockSpec((B, C), lambda: (0, 0)),
    )(cls, wp, bp, wfc, bfc)


# ----------------------------------------------------------------------------
# Model (embedding gathers are XLA glue, everything else is fused kernels)
# ----------------------------------------------------------------------------

class Config:
    vocab_size = 1000
    type_vocab_size = 2
    max_position_embeddings = 64
    hidden_size = 64
    num_attention_heads = 2
    intermediate_size = 128
    num_hidden_layers = 2
    num_classes = 4
    layer_norm_eps = 1e-12


def init_params(cfg, key):
    def dense(key, fan_in, fan_out):
        return (0.02 * jax.random.normal(key, (fan_in, fan_out), jnp.float32),
                jnp.zeros((fan_out,), jnp.float32))

    keys = iter(jax.random.split(key, 8 + 8 * cfg.num_hidden_layers))
    p = {}
    p["word_emb"] = 0.02 * jax.random.normal(
        next(keys), (cfg.vocab_size, cfg.hidden_size), jnp.float32)
    p["pos_emb"] = 0.02 * jax.random.normal(
        next(keys), (cfg.max_position_embeddings, cfg.hidden_size), jnp.float32)
    p["tok_emb"] = 0.02 * jax.random.normal(
        next(keys), (cfg.type_vocab_size, cfg.hidden_size), jnp.float32)
    p["emb_ln_g"] = jnp.ones((cfg.hidden_size,), jnp.float32)
    p["emb_ln_b"] = jnp.zeros((cfg.hidden_size,), jnp.float32)

    p["layers"] = []
    for _ in range(cfg.num_hidden_layers):
        lp = {}
        lp["wq"], lp["bq"] = dense(next(keys), cfg.hidden_size, cfg.hidden_size)
        lp["wk"], lp["bk"] = dense(next(keys), cfg.hidden_size, cfg.hidden_size)
        lp["wv"], lp["bv"] = dense(next(keys), cfg.hidden_size, cfg.hidden_size)
        lp["wo"], lp["bo"] = dense(next(keys), cfg.hidden_size, cfg.hidden_size)
        lp["attn_ln_g"] = jnp.ones((cfg.hidden_size,), jnp.float32)
        lp["attn_ln_b"] = jnp.zeros((cfg.hidden_size,), jnp.float32)
        lp["wi"], lp["bi"] = dense(next(keys), cfg.hidden_size, cfg.intermediate_size)
        lp["wo2"], lp["bo2"] = dense(next(keys), cfg.intermediate_size, cfg.hidden_size)
        lp["out_ln_g"] = jnp.ones((cfg.hidden_size,), jnp.float32)
        lp["out_ln_b"] = jnp.zeros((cfg.hidden_size,), jnp.float32)
        p["layers"].append(lp)

    p["wp"], p["bp"] = dense(next(keys), cfg.hidden_size, cfg.hidden_size)    # pooler
    p["wfc"], p["bfc"] = dense(next(keys), cfg.hidden_size, cfg.num_classes)  # classifier
    return p


def prepare_inference_params(params, cfg):
    """One-time weight prep: concat qkv, fold 1/sqrt(d) into q, cast to bf16."""
    H = cfg.hidden_size
    I = cfg.intermediate_size
    d = H // cfg.num_attention_heads
    scale = 1.0 / math.sqrt(d)

    prep = {
        "word_emb": params["word_emb"],
        "pos_emb": params["pos_emb"],
        "tok_emb": params["tok_emb"],
        "emb_ln_g": params["emb_ln_g"].reshape(1, 1, H),
        "emb_ln_b": params["emb_ln_b"].reshape(1, 1, H),
        "wp": params["wp"].astype(_BF16),
        "bp": params["bp"].reshape(1, H),
        "wfc": params["wfc"].astype(_BF16),
        "bfc": params["bfc"].reshape(1, cfg.num_classes),
        "layers": [],
    }
    for lp in params["layers"]:
        wqkv = jnp.concatenate(
            [lp["wq"] * scale, lp["wk"], lp["wv"]], axis=1).astype(_BF16)
        bqkv = jnp.concatenate(
            [lp["bq"] * scale, lp["bk"], lp["bv"]]).reshape(1, 3 * H)
        prep["layers"].append({
            "wqkv": wqkv, "bqkv": bqkv,
            "wo": lp["wo"].astype(_BF16), "bo": lp["bo"].reshape(1, H),
            "ln1g": lp["attn_ln_g"].reshape(1, H),
            "ln1b": lp["attn_ln_b"].reshape(1, H),
            "wi": lp["wi"].astype(_BF16), "bi": lp["bi"].reshape(1, I),
            "wo2": lp["wo2"].astype(_BF16), "bo2": lp["bo2"].reshape(1, H),
            "ln2g": lp["out_ln_g"].reshape(1, H),
            "ln2b": lp["out_ln_b"].reshape(1, H),
        })
    return prep


def bigbird_classifier_forward(prep, input_ids, attention_mask,
                               token_type_ids, cfg):
    B, S = input_ids.shape

    # --- embeddings: gathers are XLA glue; sum + LayerNorm fused in Pallas ---
    word_e = jnp.take(prep["word_emb"], input_ids, axis=0)
    tok_e = jnp.take(prep["tok_emb"], token_type_ids, axis=0)
    pos_e = prep["pos_emb"][None, :S, :]
    h = embed_layernorm(word_e, pos_e, tok_e, prep["emb_ln_g"],
                        prep["emb_ln_b"], eps=cfg.layer_norm_eps)   # bf16
    # embedding dropout: eval mode => identity

    # additive attention mask, BERT/BigBird convention: (1 - mask) * -10000
    mask_add = ((1.0 - attention_mask.astype(jnp.float32)) * -10000.0
                ).reshape(B, 1, S)

    attentions = []
    for lp in prep["layers"]:
        h, probs = encoder_layer(h, mask_add, lp, cfg)    # fused per-layer kernel
        attentions.append(probs)                          # [B, nH, S, S] bf16

    # --- pooler (tanh of CLS projection) + dropout(eval) + classifier, fused ---
    cls = h[:, 0, :]
    logits = pooler_classifier(cls, prep["wp"], prep["bp"],
                               prep["wfc"], prep["bfc"])
    return logits, tuple(attentions)


# ----------------------------------------------------------------------------
# Main
# ----------------------------------------------------------------------------

if __name__ == "__main__":
    cfg = Config()
    key = jax.random.PRNGKey(0)
    k_param, k_ids, k_mask = jax.random.split(key, 3)

    params = init_params(cfg, k_param)
    prep = prepare_inference_params(params, cfg)          # one-time weight prep

    B, S = 2, 16
    input_ids = jax.random.randint(k_ids, (B, S), 0, cfg.vocab_size, jnp.int32)
    # second example has the last 4 tokens masked out to exercise the mask path
    attention_mask = jnp.concatenate(
        [jnp.ones((1, S), jnp.int32),
         jnp.concatenate([jnp.ones((1, S - 4), jnp.int32),
                          jnp.zeros((1, 4), jnp.int32)], axis=1)], axis=0)
    token_type_ids = jnp.zeros((B, S), jnp.int32)

    fwd = jax.jit(functools.partial(bigbird_classifier_forward, cfg=cfg))
    logits, attentions = fwd(prep, input_ids, attention_mask, token_type_ids)
    jax.block_until_ready((logits, attentions))

    assert logits.shape == (B, cfg.num_classes)
    assert len(attentions) == cfg.num_hidden_layers
    assert attentions[0].shape == (B, cfg.num_attention_heads, S, S)
    assert bool(jnp.all(jnp.isfinite(logits)))
    # attention rows are probability distributions (stored bf16)
    row_sums = jnp.sum(attentions[0].astype(jnp.float32), axis=-1)
    assert bool(jnp.all(jnp.abs(row_sums - 1.0) < 1e-2))
    print("KERNEL_OK")
</pallas_src>

<mosaic_0001>
module attributes {stable_mosaic.version = 11 : i64} {
  func.func @kernel(%arg0: memref<2x16x64xf32, #tpu.memory_space<vmem>>, %arg1: memref<1x16x64xf32, #tpu.memory_space<vmem>>, %arg2: memref<2x16x64xf32, #tpu.memory_space<vmem>>, %arg3: memref<1x1x64xf32, #tpu.memory_space<vmem>>, %arg4: memref<1x1x64xf32, #tpu.memory_space<vmem>>, %arg5: memref<2x16x64xbf16, #tpu.memory_space<vmem>>) attributes {dimension_semantics = [], scalar_prefetch = 0 : i64, scratch_operands = 0 : i64, tpu.core_type = #tpu.core_type<tc>} {
    %c0 = arith.constant 0 : index
    %c0_0 = arith.constant 0 : index
    %c0_1 = arith.constant 0 : index
    %0 = vector.load %arg0[%c0, %c0_0, %c0_1] : memref<2x16x64xf32, #tpu.memory_space<vmem>>, vector<2x16x64xf32>
    %c0_2 = arith.constant 0 : index
    %c0_3 = arith.constant 0 : index
    %c0_4 = arith.constant 0 : index
    %1 = vector.load %arg1[%c0_2, %c0_3, %c0_4] : memref<1x16x64xf32, #tpu.memory_space<vmem>>, vector<1x16x64xf32>
    %2 = vector.broadcast %1 : vector<1x16x64xf32> to vector<2x16x64xf32>
    %3 = arith.addf %0, %2 : vector<2x16x64xf32>
    %c0_5 = arith.constant 0 : index
    %c0_6 = arith.constant 0 : index
    %c0_7 = arith.constant 0 : index
    %4 = vector.load %arg2[%c0_5, %c0_6, %c0_7] : memref<2x16x64xf32, #tpu.memory_space<vmem>>, vector<2x16x64xf32>
    %5 = arith.addf %3, %4 : vector<2x16x64xf32>
    %cst = arith.constant dense<0.000000e+00> : vector<2x16xf32>
    %6 = vector.multi_reduction <add>, %5, %cst [2] : vector<2x16x64xf32> to vector<2x16xf32>
    %7 = vector.shape_cast %6 : vector<2x16xf32> to vector<2x16x1xf32>
    %cst_8 = arith.constant 6.400000e+01 : f32
    %8 = vector.broadcast %cst_8 : f32 to vector<2x16x1xf32>
    %9 = arith.divf %7, %8 : vector<2x16x1xf32>
    %10 = vector.broadcast %9 : vector<2x16x1xf32> to vector<2x16x64xf32>
    %11 = arith.subf %5, %10 : vector<2x16x64xf32>
    %12 = arith.mulf %11, %11 : vector<2x16x64xf32>
    %cst_9 = arith.constant dense<0.000000e+00> : vector<2x16xf32>
    %13 = vector.multi_reduction <add>, %12, %cst_9 [2] : vector<2x16x64xf32> to vector<2x16xf32>
    %14 = vector.shape_cast %13 : vector<2x16xf32> to vector<2x16x1xf32>
    %cst_10 = arith.constant 6.400000e+01 : f32
    %15 = vector.broadcast %cst_10 : f32 to vector<2x16x1xf32>
    %16 = arith.divf %14, %15 : vector<2x16x1xf32>
    %cst_11 = arith.constant 9.99999996E-13 : f32
    %17 = vector.broadcast %cst_11 : f32 to vector<2x16x1xf32>
    %18 = arith.addf %16, %17 : vector<2x16x1xf32>
    %19 = math.rsqrt %18 : vector<2x16x1xf32>
    %20 = vector.broadcast %19 : vector<2x16x1xf32> to vector<2x16x64xf32>
    %21 = arith.mulf %11, %20 : vector<2x16x64xf32>
    %c0_12 = arith.constant 0 : index
    %c0_13 = arith.constant 0 : index
    %c0_14 = arith.constant 0 : index
    %22 = vector.load %arg3[%c0_12, %c0_13, %c0_14] : memref<1x1x64xf32, #tpu.memory_space<vmem>>, vector<1x1x64xf32>
    %23 = vector.broadcast %22 : vector<1x1x64xf32> to vector<2x16x64xf32>
    %24 = arith.mulf %21, %23 : vector<2x16x64xf32>
    %c0_15 = arith.constant 0 : index
    %c0_16 = arith.constant 0 : index
    %c0_17 = arith.constant 0 : index
    %25 = vector.load %arg4[%c0_15, %c0_16, %c0_17] : memref<1x1x64xf32, #tpu.memory_space<vmem>>, vector<1x1x64xf32>
    %26 = vector.broadcast %25 : vector<1x1x64xf32> to vector<2x16x64xf32>
    %27 = arith.addf %24, %26 : vector<2x16x64xf32>
    %28 = arith.truncf %27 : vector<2x16x64xf32> to vector<2x16x64xbf16>
    %c0_18 = arith.constant 0 : index
    %c0_19 = arith.constant 0 : index
    %c0_20 = arith.constant 0 : index
    %29 = vector.load %arg5[%c0_18, %c0_19, %c0_20] : memref<2x16x64xbf16, #tpu.memory_space<vmem>>, vector<2x16x64xbf16>
    tpu.vector_store %arg5[%c0_18, %c0_19, %c0_20], %28 {strides = array<i32>} : memref<2x16x64xbf16, #tpu.memory_space<vmem>>, vector<2x16x64xbf16>,
    return
  }
}

module attributes {stable_mosaic.version = 11 : i64} {
  func.func @_head_kernel(%arg0: memref<2x64xbf16, #tpu.memory_space<vmem>>, %arg1: memref<64x64xbf16, #tpu.memory_space<vmem>>, %arg2: memref<1x64xf32, #tpu.memory_space<vmem>>, %arg3: memref<64x4xbf16, #tpu.memory_space<vmem>>, %arg4: memref<1x4xf32, #tpu.memory_space<vmem>>, %arg5: memref<2x4xf32, #tpu.memory_space<vmem>>) attributes {dimension_semantics = [], scalar_prefetch = 0 : i64, scratch_operands = 0 : i64, tpu.core_type = #tpu.core_type<tc>} {
    %c0 = arith.constant 0 : index
    %c0_0 = arith.constant 0 : index
    %0 = vector.load %arg0[%c0, %c0_0] : memref<2x64xbf16, #tpu.memory_space<vmem>>, vector<2x64xbf16>
    %c0_1 = arith.constant 0 : index
    %c0_2 = arith.constant 0 : index
    %1 = vector.load %arg1[%c0_1, %c0_2] : memref<64x64xbf16, #tpu.memory_space<vmem>>, vector<64x64xbf16>
    %cst = arith.constant dense<0.000000e+00> : vector<2x64xf32>
    %2 = tpu.matmul %0, %1, %cst {dimension_numbers = #tpu.dot_dimension_numbers<[1], [0], [0], [1], [0, 0, 1, 1], [], []>} : vector<2x64xbf16>, vector<64x64xbf16>, vector<2x64xf32> -> vector<2x64xf32>
    %c0_3 = arith.constant 0 : index
    %c0_4 = arith.constant 0 : index
    %3 = vector.load %arg2[%c0_3, %c0_4] : memref<1x64xf32, #tpu.memory_space<vmem>>, vector<1x64xf32>
    %4 = vector.broadcast %3 : vector<1x64xf32> to vector<2x64xf32>
    %5 = arith.addf %2, %4 : vector<2x64xf32>
    %6 = math.tanh %5 : vector<2x64xf32>
    %7 = arith.truncf %6 : vector<2x64xf32> to vector<2x64xbf16>
    %c0_5 = arith.constant 0 : index
    %c0_6 = arith.constant 0 : index
    %8 = vector.load %arg3[%c0_5, %c0_6] : memref<64x4xbf16, #tpu.memory_space<vmem>>, vector<64x4xbf16>
    %cst_7 = arith.constant dense<0.000000e+00> : vector<2x4xf32>
    %9 = tpu.matmul %7, %8, %cst_7 {dimension_numbers = #tpu.dot_dimension_numbers<[1], [0], [0], [1], [0, 0, 1, 1], [], []>} : vector<2x64xbf16>, vector<64x4xbf16>, vector<2x4xf32> -> vector<2x4xf32>
    %c0_8 = arith.constant 0 : index
    %c0_9 = arith.constant 0 : index
    %10 = vector.load %arg4[%c0_8, %c0_9] : memref<1x4xf32, #tpu.memory_space<vmem>>, vector<1x4xf32>
    %11 = vector.broadcast %10 : vector<1x4xf32> to vector<2x4xf32>
    %12 = arith.addf %9, %11 : vector<2x4xf32>
    %c0_10 = arith.constant 0 : index
    %c0_11 = arith.constant 0 : index
    %13 = vector.load %arg5[%c0_10, %c0_11] : memref<2x4xf32, #tpu.memory_space<vmem>>, vector<2x4xf32>
    tpu.vector_store %arg5[%c0_10, %c0_11], %12 {strides = array<i32>} : memref<2x4xf32, #tpu.memory_space<vmem>>, vector<2x4xf32>,
    return
  }
}

module attributes {stable_mosaic.version = 11 : i64} {
  func.func @kernel(%arg0: i32, %arg1: memref<2x16x64xbf16, #tpu.memory_space<vmem>>, %arg2: memref<2x1x16xf32, #tpu.memory_space<vmem>>, %arg3: memref<64x192xbf16, #tpu.memory_space<vmem>>, %arg4: memref<1x192xf32, #tpu.memory_space<vmem>>, %arg5: memref<64x64xbf16, #tpu.memory_space<vmem>>, %arg6: memref<1x64xf32, #tpu.memory_space<vmem>>, %arg7: memref<1x64xf32, #tpu.memory_space<vmem>>, %arg8: memref<1x64xf32, #tpu.memory_space<vmem>>, %arg9: memref<64x128xbf16, #tpu.memory_space<vmem>>, %arg10: memref<1x128xf32, #tpu.memory_space<vmem>>, %arg11: memref<128x64xbf16, #tpu.memory_space<vmem>>, %arg12: memref<1x64xf32, #tpu.memory_space<vmem>>, %arg13: memref<1x64xf32, #tpu.memory_space<vmem>>, %arg14: memref<1x64xf32, #tpu.memory_space<vmem>>, %arg15: memref<2x16x64xbf16, #tpu.memory_space<vmem>>, %arg16: memref<2x2x16x16xbf16, #tpu.memory_space<vmem>>) attributes {dimension_semantics = [#tpu.dimension_semantics<parallel>], iteration_bounds = array<i64: 1>, scalar_prefetch = 0 : i64, scratch_operands = 0 : i64, tpu.core_type = #tpu.core_type<tc>, window_params = [{transform_indices = @transform_0, window_bounds = array<i64: 2, 16, 64>}, {transform_indices = @transform_1, window_bounds = array<i64: 2, 1, 16>}, {pipeline_mode = #tpu.pipeline_mode<synchronous>, transform_indices = @transform_2, window_bounds = array<i64: 64, 192>}, {pipeline_mode = #tpu.pipeline_mode<synchronous>, transform_indices = @transform_3, window_bounds = array<i64: 1, 192>}, {pipeline_mode = #tpu.pipeline_mode<synchronous>, transform_indices = @transform_4, window_bounds = array<i64: 64, 64>}, {pipeline_mode = #tpu.pipeline_mode<synchronous>, transform_indices = @transform_5, window_bounds = array<i64: 1, 64>}, {pipeline_mode = #tpu.pipeline_mode<synchronous>, transform_indices = @transform_6, window_bounds = array<i64: 1, 64>}, {pipeline_mode = #tpu.pipeline_mode<synchronous>, transform_indices = @transform_7, window_bounds = array<i64: 1, 64>}, {pipeline_mode = #tpu.pipeline_mode<synchronous>, transform_indices = @transform_8, window_bounds = array<i64: 64, 128>}, {pipeline_mode = #tpu.pipeline_mode<synchronous>, transform_indices = @transform_9, window_bounds = array<i64: 1, 128>}, {pipeline_mode = #tpu.pipeline_mode<synchronous>, transform_indices = @transform_10, window_bounds = array<i64: 128, 64>}, {pipeline_mode = #tpu.pipeline_mode<synchronous>, transform_indices = @transform_11, window_bounds = array<i64: 1, 64>}, {pipeline_mode = #tpu.pipeline_mode<synchronous>, transform_indices = @transform_12, window_bounds = array<i64: 1, 64>}, {pipeline_mode = #tpu.pipeline_mode<synchronous>, transform_indices = @transform_13, window_bounds = array<i64: 1, 64>}, {transform_indices = @transform_14, window_bounds = array<i64: 2, 16, 64>}, {transform_indices = @transform_15, window_bounds = array<i64: 2, 2, 16, 16>}]} {
    %c0 = arith.constant 0 : index
    %c0_0 = arith.constant 0 : index
    %c0_1 = arith.constant 0 : index
    %0 = vector.load %arg1[%c0, %c0_0, %c0_1] : memref<2x16x64xbf16, #tpu.memory_space<vmem>>, vector<2x16x64xbf16>
    %1 = vector.shape_cast %0 : vector<2x16x64xbf16> to vector<32x64xbf16>
    %2 = arith.extf %1 : vector<32x64xbf16> to vector<32x64xf32>
    %c0_2 = arith.constant 0 : index
    %c0_3 = arith.constant 0 : index
    %3 = vector.load %arg3[%c0_2, %c0_3] : memref<64x192xbf16, #tpu.memory_space<vmem>>, vector<64x192xbf16>
    %cst = arith.constant dense<0.000000e+00> : vector<32x192xf32>
    %4 = tpu.matmul %1, %3, %cst {dimension_numbers = #tpu.dot_dimension_numbers<[1], [0], [0], [1], [0, 0, 1, 1], [], []>} : vector<32x64xbf16>, vector<64x192xbf16>, vector<32x192xf32> -> vector<32x192xf32>
    %c0_4 = arith.constant 0 : index
    %c0_5 = arith.constant 0 : index
    %5 = vector.load %arg4[%c0_4, %c0_5] : memref<1x192xf32, #tpu.memory_space<vmem>>, vector<1x192xf32>
    %6 = vector.broadcast %5 : vector<1x192xf32> to vector<32x192xf32>
    %7 = arith.addf %4, %6 : vector<32x192xf32>
    %c0_6 = arith.constant 0 : index
    %c0_7 = arith.constant 0 : index
    %8 = vector.load %arg5[%c0_6, %c0_7] : memref<64x64xbf16, #tpu.memory_space<vmem>>, vector<64x64xbf16>
    %c0_8 = arith.constant 0 : index
    %c0_9 = arith.constant 0 : index
    %c0_10 = arith.constant 0 : index
    %9 = vector.load %arg2[%c0_8, %c0_9, %c0_10] : memref<2x1x16xf32, #tpu.memory_space<vmem>>, vector<1x1x16xf32>
    %10 = vector.shape_cast %9 : vector<1x1x16xf32> to vector<1x16xf32>
    %11 = vector.extract_strided_slice %7 {offsets = [0, 0], sizes = [16, 32], strides = [1, 1]} : vector<32x192xf32> to vector<16x32xf32>
    %12 = vector.extract_strided_slice %7 {offsets = [0, 64], sizes = [16, 32], strides = [1, 1]} : vector<32x192xf32> to vector<16x32xf32>
    %13 = vector.extract_strided_slice %7 {offsets = [0, 128], sizes = [16, 32], strides = [1, 1]} : vector<32x192xf32> to vector<16x32xf32>
    %14 = arith.truncf %11 : vector<16x32xf32> to vector<16x32xbf16>
    %15 = arith.truncf %12 : vector<16x32xf32> to vector<16x32xbf16>
    %cst_11 = arith.constant dense<0.000000e+00> : vector<16x16xf32>
    %16 = tpu.matmul %14, %15, %cst_11 {dimension_numbers = #tpu.dot_dimension_numbers<[1], [1], [0], [0], [0, 0, 1, 0], [], []>} : vector<16x32xbf16>, vector<16x32xbf16>, vector<16x16xf32> -> vector<16x16xf32>
    %17 = vector.broadcast %10 : vector<1x16xf32> to vector<16x16xf32>
    %18 = arith.addf %16, %17 : vector<16x16xf32>
    %cst_12 = arith.constant dense<0xFF800000> : vector<16xf32>
    %19 = vector.multi_reduction <maximumf>, %18, %cst_12 [1] : vector<16x16xf32> to vector<16xf32>
    %20 = vector.shape_cast %19 : vector<16xf32> to vector<16x1xf32>
    %21 = vector.broadcast %20 : vector<16x1xf32> to vector<16x16xf32>
    %22 = arith.subf %18, %21 : vector<16x16xf32>
    %23 = math.exp %22 : vector<16x16xf32>
    %cst_13 = arith.constant dense<0.000000e+00> : vector<16xf32>
    %24 = vector.multi_reduction <add>, %23, %cst_13 [1] : vector<16x16xf32> to vector<16xf32>
    %25 = vector.shape_cast %24 : vector<16xf32> to vector<16x1xf32>
    %26 = vector.broadcast %25 : vector<16x1xf32> to vector<16x16xf32>
    %27 = arith.divf %23, %26 : vector<16x16xf32>
    %28 = arith.truncf %27 : vector<16x16xf32> to vector<16x16xbf16>
    %c0_14 = arith.constant 0 : index
    %c0_15 = arith.constant 0 : index
    %c0_16 = arith.constant 0 : index
    %c0_17 = arith.constant 0 : index
    %29 = vector.load %arg16[%c0_14, %c0_15, %c0_16, %c0_17] : memref<2x2x16x16xbf16, #tpu.memory_space<vmem>>, vector<1x1x16x16xbf16>
    %30 = vector.shape_cast %29 : vector<1x1x16x16xbf16> to vector<16x16xbf16>
    %31 = vector.shape_cast %28 : vector<16x16xbf16> to vector<1x1x16x16xbf16>
    tpu.vector_store %arg16[%c0_14, %c0_15, %c0_16, %c0_17], %31 {strides = array<i32>} : memref<2x2x16x16xbf16, #tpu.memory_space<vmem>>, vector<1x1x16x16xbf16>,
    %32 = arith.truncf %27 : vector<16x16xf32> to vector<16x16xbf16>
    %33 = arith.truncf %13 : vector<16x32xf32> to vector<16x32xbf16>
    %cst_18 = arith.constant dense<0.000000e+00> : vector<16x32xf32>
    %34 = tpu.matmul %32, %33, %cst_18 {dimension_numbers = #tpu.dot_dimension_numbers<[1], [0], [0], [1], [0, 0, 1, 1], [], []>} : vector<16x16xbf16>, vector<16x32xbf16>, vector<16x32xf32> -> vector<16x32xf32>
    %35 = arith.truncf %34 : vector<16x32xf32> to vector<16x32xbf16>
    %36 = vector.extract_strided_slice %8 {offsets = [0, 0], sizes = [32, 64], strides = [1, 1]} : vector<64x64xbf16> to vector<32x64xbf16>
    %cst_19 = arith.constant dense<0.000000e+00> : vector<16x64xf32>
    %37 = tpu.matmul %35, %36, %cst_19 {dimension_numbers = #tpu.dot_dimension_numbers<[1], [0], [0], [1], [0, 0, 1, 1], [], []>} : vector<16x32xbf16>, vector<32x64xbf16>, vector<16x64xf32> -> vector<16x64xf32>
    %38 = vector.extract_strided_slice %7 {offsets = [0, 32], sizes = [16, 32], strides = [1, 1]} : vector<32x192xf32> to vector<16x32xf32>
    %39 = vector.extract_strided_slice %7 {offsets = [0, 96], sizes = [16, 32], strides = [1, 1]} : vector<32x192xf32> to vector<16x32xf32>
    %40 = vector.extract_strided_slice %7 {offsets = [0, 160], sizes = [16, 32], strides = [1, 1]} : vector<32x192xf32> to vector<16x32xf32>
    %41 = arith.truncf %38 : vector<16x32xf32> to vector<16x32xbf16>
    %42 = arith.truncf %39 : vector<16x32xf32> to vector<16x32xbf16>
    %cst_20 = arith.constant dense<0.000000e+00> : vector<16x16xf32>
    %43 = tpu.matmul %41, %42, %cst_20 {dimension_numbers = #tpu.dot_dimension_numbers<[1], [1], [0], [0], [0, 0, 1, 0], [], []>} : vector<16x32xbf16>, vector<16x32xbf16>, vector<16x16xf32> -> vector<16x16xf32>
    %44 = vector.broadcast %10 : vector<1x16xf32> to vector<16x16xf32>
    %45 = arith.addf %43, %44 : vector<16x16xf32>
    %cst_21 = arith.constant dense<0xFF800000> : vector<16xf32>
    %46 = vector.multi_reduction <maximumf>, %45, %cst_21 [1] : vector<16x16xf32> to vector<16xf32>
    %47 = vector.shape_cast %46 : vector<16xf32> to vector<16x1xf32>
    %48 = vector.broadcast %47 : vector<16x1xf32> to vector<16x16xf32>
    %49 = arith.subf %45, %48 : vector<16x16xf32>
    %50 = math.exp %49 : vector<16x16xf32>
    %cst_22 = arith.constant dense<0.000000e+00> : vector<16xf32>
    %51 = vector.multi_reduction <add>, %50, %cst_22 [1] : vector<16x16xf32> to vector<16xf32>
    %52 = vector.shape_cast %51 : vector<16xf32> to vector<16x1xf32>
    %53 = vector.broadcast %52 : vector<16x1xf32> to vector<16x16xf32>
    %54 = arith.divf %50, %53 : vector<16x16xf32>
    %55 = arith.truncf %54 : vector<16x16xf32> to vector<16x16xbf16>
    %c0_23 = arith.constant 0 : index
    %c1 = arith.constant 1 : index
    %c0_24 = arith.constant 0 : index
    %c0_25 = arith.constant 0 : index
    %56 = vector.load %arg16[%c0_23, %c1, %c0_24, %c0_25] : memref<2x2x16x16xbf16, #tpu.memory_space<vmem>>, vector<1x1x16x16xbf16>
    %57 = vector.shape_cast %56 : vector<1x1x16x16xbf16> to vector<16x16xbf16>
    %58 = vector.shape_cast %55 : vector<16x16xbf16> to vector<1x1x16x16xbf16>
    tpu.vector_store %arg16[%c0_23, %c1, %c0_24, %c0_25], %58 {strides = array<i32>} : memref<2x2x16x16xbf16, #tpu.memory_space<vmem>>, vector<1x1x16x16xbf16>,
    %59 = arith.truncf %54 : vector<16x16xf32> to vector<16x16xbf16>
    %60 = arith.truncf %40 : vector<16x32xf32> to vector<16x32xbf16>
    %cst_26 = arith.constant dense<0.000000e+00> : vector<16x32xf32>
    %61 = tpu.matmul %59, %60, %cst_26 {dimension_numbers = #tpu.dot_dimension_numbers<[1], [0], [0], [1], [0, 0, 1, 1], [], []>} : vector<16x16xbf16>, vector<16x32xbf16>, vector<16x32xf32> -> vector<16x32xf32>
    %62 = arith.truncf %61 : vector<16x32xf32> to vector<16x32xbf16>
    %63 = vector.extract_strided_slice %8 {offsets = [32, 0], sizes = [32, 64], strides = [1, 1]} : vector<64x64xbf16> to vector<32x64xbf16>
    %cst_27 = arith.constant dense<0.000000e+00> : vector<16x64xf32>
    %64 = tpu.matmul %62, %63, %cst_27 {dimension_numbers = #tpu.dot_dimension_numbers<[1], [0], [0], [1], [0, 0, 1, 1], [], []>} : vector<16x32xbf16>, vector<32x64xbf16>, vector<16x64xf32> -> vector<16x64xf32>
    %65 = arith.addf %37, %64 : vector<16x64xf32>
    %c1_28 = arith.constant 1 : index
    %c0_29 = arith.constant 0 : index
    %c0_30 = arith.constant 0 : index
    %66 = vector.load %arg2[%c1_28, %c0_29, %c0_30] : memref<2x1x16xf32, #tpu.memory_space<vmem>>, vector<1x1x16xf32>
    %67 = vector.shape_cast %66 : vector<1x1x16xf32> to vector<1x16xf32>
    %68 = vector.extract_strided_slice %7 {offsets = [16, 0], sizes = [16, 32], strides = [1, 1]} : vector<32x192xf32> to vector<16x32xf32>
    %69 = vector.extract_strided_slice %7 {offsets = [16, 64], sizes = [16, 32], strides = [1, 1]} : vector<32x192xf32> to vector<16x32xf32>
    %70 = vector.extract_strided_slice %7 {offsets = [16, 128], sizes = [16, 32], strides = [1, 1]} : vector<32x192xf32> to vector<16x32xf32>
    %71 = arith.truncf %68 : vector<16x32xf32> to vector<16x32xbf16>
    %72 = arith.truncf %69 : vector<16x32xf32> to vector<16x32xbf16>
    %cst_31 = arith.constant dense<0.000000e+00> : vector<16x16xf32>
    %73 = tpu.matmul %71, %72, %cst_31 {dimension_numbers = #tpu.dot_dimension_numbers<[1], [1], [0], [0], [0, 0, 1, 0], [], []>} : vector<16x32xbf16>, vector<16x32xbf16>, vector<16x16xf32> -> vector<16x16xf32>
    %74 = vector.broadcast %67 : vector<1x16xf32> to vector<16x16xf32>
    %75 = arith.addf %73, %74 : vector<16x16xf32>
    %cst_32 = arith.constant dense<0xFF800000> : vector<16xf32>
    %76 = vector.multi_reduction <maximumf>, %75, %cst_32 [1] : vector<16x16xf32> to vector<16xf32>
    %77 = vector.shape_cast %76 : vector<16xf32> to vector<16x1xf32>
    %78 = vector.broadcast %77 : vector<16x1xf32> to vector<16x16xf32>
    %79 = arith.subf %75, %78 : vector<16x16xf32>
    %80 = math.exp %79 : vector<16x16xf32>
    %cst_33 = arith.constant dense<0.000000e+00> : vector<16xf32>
    %81 = vector.multi_reduction <add>, %80, %cst_33 [1] : vector<16x16xf32> to vector<16xf32>
    %82 = vector.shape_cast %81 : vector<16xf32> to vector<16x1xf32>
    %83 = vector.broadcast %82 : vector<16x1xf32> to vector<16x16xf32>
    %84 = arith.divf %80, %83 : vector<16x16xf32>
    %85 = arith.truncf %84 : vector<16x16xf32> to vector<16x16xbf16>
    %c1_34 = arith.constant 1 : index
    %c0_35 = arith.constant 0 : index
    %c0_36 = arith.constant 0 : index
    %c0_37 = arith.constant 0 : index
    %86 = vector.load %arg16[%c1_34, %c0_35, %c0_36, %c0_37] : memref<2x2x16x16xbf16, #tpu.memory_space<vmem>>, vector<1x1x16x16xbf16>
    %87 = vector.shape_cast %86 : vector<1x1x16x16xbf16> to vector<16x16xbf16>
    %88 = vector.shape_cast %85 : vector<16x16xbf16> to vector<1x1x16x16xbf16>
    tpu.vector_store %arg16[%c1_34, %c0_35, %c0_36, %c0_37], %88 {strides = array<i32>} : memref<2x2x16x16xbf16, #tpu.memory_space<vmem>>, vector<1x1x16x16xbf16>,
    %89 = arith.truncf %84 : vector<16x16xf32> to vector<16x16xbf16>
    %90 = arith.truncf %70 : vector<16x32xf32> to vector<16x32xbf16>
    %cst_38 = arith.constant dense<0.000000e+00> : vector<16x32xf32>
    %91 = tpu.matmul %89, %90, %cst_38 {dimension_numbers = #tpu.dot_dimension_numbers<[1], [0], [0], [1], [0, 0, 1, 1], [], []>} : vector<16x16xbf16>, vector<16x32xbf16>, vector<16x32xf32> -> vector<16x32xf32>
    %92 = arith.truncf %91 : vector<16x32xf32> to vector<16x32xbf16>
    %93 = vector.extract_strided_slice %8 {offsets = [0, 0], sizes = [32, 64], strides = [1, 1]} : vector<64x64xbf16> to vector<32x64xbf16>
    %cst_39 = arith.constant dense<0.000000e+00> : vector<16x64xf32>
    %94 = tpu.matmul %92, %93, %cst_39 {dimension_numbers = #tpu.dot_dimension_numbers<[1], [0], [0], [1], [0, 0, 1, 1], [], []>} : vector<16x32xbf16>, vector<32x64xbf16>, vector<16x64xf32> -> vector<16x64xf32>
    %95 = vector.extract_strided_slice %7 {offsets = [16, 32], sizes = [16, 32], strides = [1, 1]} : vector<32x192xf32> to vector<16x32xf32>
    %96 = vector.extract_strided_slice %7 {offsets = [16, 96], sizes = [16, 32], strides = [1, 1]} : vector<32x192xf32> to vector<16x32xf32>
    %97 = vector.extract_strided_slice %7 {offsets = [16, 160], sizes = [16, 32], strides = [1, 1]} : vector<32x192xf32> to vector<16x32xf32>
    %98 = arith.truncf %95 : vector<16x32xf32> to vector<16x32xbf16>
    %99 = arith.truncf %96 : vector<16x32xf32> to vector<16x32xbf16>
    %cst_40 = arith.constant dense<0.000000e+00> : vector<16x16xf32>
    %100 = tpu.matmul %98, %99, %cst_40 {dimension_numbers = #tpu.dot_dimension_numbers<[1], [1], [0], [0], [0, 0, 1, 0], [], []>} : vector<16x32xbf16>, vector<16x32xbf16>, vector<16x16xf32> -> vector<16x16xf32>
    %101 = vector.broadcast %67 : vector<1x16xf32> to vector<16x16xf32>
    %102 = arith.addf %100, %101 : vector<16x16xf32>
    %cst_41 = arith.constant dense<0xFF800000> : vector<16xf32>
    %103 = vector.multi_reduction <maximumf>, %102, %cst_41 [1] : vector<16x16xf32> to vector<16xf32>
    %104 = vector.shape_cast %103 : vector<16xf32> to vector<16x1xf32>
    %105 = vector.broadcast %104 : vector<16x1xf32> to vector<16x16xf32>
    %106 = arith.subf %102, %105 : vector<16x16xf32>
    %107 = math.exp %106 : vector<16x16xf32>
    %cst_42 = arith.constant dense<0.000000e+00> : vector<16xf32>
    %108 = vector.multi_reduction <add>, %107, %cst_42 [1] : vector<16x16xf32> to vector<16xf32>
    %109 = vector.shape_cast %108 : vector<16xf32> to vector<16x1xf32>
    %110 = vector.broadcast %109 : vector<16x1xf32> to vector<16x16xf32>
    %111 = arith.divf %107, %110 : vector<16x16xf32>
    %112 = arith.truncf %111 : vector<16x16xf32> to vector<16x16xbf16>
    %c1_43 = arith.constant 1 : index
    %c1_44 = arith.constant 1 : index
    %c0_45 = arith.constant 0 : index
    %c0_46 = arith.constant 0 : index
    %113 = vector.load %arg16[%c1_43, %c1_44, %c0_45, %c0_46] : memref<2x2x16x16xbf16, #tpu.memory_space<vmem>>, vector<1x1x16x16xbf16>
    %114 = vector.shape_cast %113 : vector<1x1x16x16xbf16> to vector<16x16xbf16>
    %115 = vector.shape_cast %112 : vector<16x16xbf16> to vector<1x1x16x16xbf16>
    tpu.vector_store %arg16[%c1_43, %c1_44, %c0_45, %c0_46], %115 {strides = array<i32>} : memref<2x2x16x16xbf16, #tpu.memory_space<vmem>>, vector<1x1x16x16xbf16>,
    %116 = arith.truncf %111 : vector<16x16xf32> to vector<16x16xbf16>
    %117 = arith.truncf %97 : vector<16x32xf32> to vector<16x32xbf16>
    %cst_47 = arith.constant dense<0.000000e+00> : vector<16x32xf32>
    %118 = tpu.matmul %116, %117, %cst_47 {dimension_numbers = #tpu.dot_dimension_numbers<[1], [0], [0], [1], [0, 0, 1, 1], [], []>} : vector<16x16xbf16>, vector<16x32xbf16>, vector<16x32xf32> -> vector<16x32xf32>
    %119 = arith.truncf %118 : vector<16x32xf32> to vector<16x32xbf16>
    %120 = vector.extract_strided_slice %8 {offsets = [32, 0], sizes = [32, 64], strides = [1, 1]} : vector<64x64xbf16> to vector<32x64xbf16>
    %cst_48 = arith.constant dense<0.000000e+00> : vector<16x64xf32>
    %121 = tpu.matmul %119, %120, %cst_48 {dimension_numbers = #tpu.dot_dimension_numbers<[1], [0], [0], [1], [0, 0, 1, 1], [], []>} : vector<16x32xbf16>, vector<32x64xbf16>, vector<16x64xf32> -> vector<16x64xf32>
    %122 = arith.addf %94, %121 : vector<16x64xf32>
    %123 = tpu.concatenate %65, %122 in 0 : vector<16x64xf32>, vector<16x64xf32> -> vector<32x64xf32>
    %c0_49 = arith.constant 0 : index
    %c0_50 = arith.constant 0 : index
    %124 = vector.load %arg6[%c0_49, %c0_50] : memref<1x64xf32, #tpu.memory_space<vmem>>, vector<1x64xf32>
    %125 = vector.broadcast %124 : vector<1x64xf32> to vector<32x64xf32>
    %126 = arith.addf %123, %125 : vector<32x64xf32>
    %127 = arith.addf %126, %2 : vector<32x64xf32>
    %c0_51 = arith.constant 0 : index
    %c0_52 = arith.constant 0 : index
    %128 = vector.load %arg7[%c0_51, %c0_52] : memref<1x64xf32, #tpu.memory_space<vmem>>, vector<1x64xf32>
    %c0_53 = arith.constant 0 : index
    %c0_54 = arith.constant 0 : index
    %129 = vector.load %arg8[%c0_53, %c0_54] : memref<1x64xf32, #tpu.memory_space<vmem>>, vector<1x64xf32>
    %cst_55 = arith.constant dense<0.000000e+00> : vector<32xf32>
    %130 = vector.multi_reduction <add>, %127, %cst_55 [1] : vector<32x64xf32> to vector<32xf32>
    %131 = vector.shape_cast %130 : vector<32xf32> to vector<32x1xf32>
    %cst_56 = arith.constant 6.400000e+01 : f32
    %132 = vector.broadcast %cst_56 : f32 to vector<32x1xf32>
    %133 = arith.divf %131, %132 : vector<32x1xf32>
    %134 = vector.broadcast %133 : vector<32x1xf32> to vector<32x64xf32>
    %135 = arith.subf %127, %134 : vector<32x64xf32>
    %136 = arith.mulf %135, %135 : vector<32x64xf32>
    %cst_57 = arith.constant dense<0.000000e+00> : vector<32xf32>
    %137 = vector.multi_reduction <add>, %136, %cst_57 [1] : vector<32x64xf32> to vector<32xf32>
    %138 = vector.shape_cast %137 : vector<32xf32> to vector<32x1xf32>
    %cst_58 = arith.constant 6.400000e+01 : f32
    %139 = vector.broadcast %cst_58 : f32 to vector<32x1xf32>
    %140 = arith.divf %138, %139 : vector<32x1xf32>
    %cst_59 = arith.constant 9.99999996E-13 : f32
    %141 = vector.broadcast %cst_59 : f32 to vector<32x1xf32>
    %142 = arith.addf %140, %141 : vector<32x1xf32>
    %143 = math.rsqrt %142 : vector<32x1xf32>
    %144 = vector.broadcast %143 : vector<32x1xf32> to vector<32x64xf32>
    %145 = arith.mulf %135, %144 : vector<32x64xf32>
    %146 = vector.broadcast %128 : vector<1x64xf32> to vector<32x64xf32>
    %147 = arith.mulf %145, %146 : vector<32x64xf32>
    %148 = vector.broadcast %129 : vector<1x64xf32> to vector<32x64xf32>
    %149 = arith.addf %147, %148 : vector<32x64xf32>
    %150 = arith.truncf %149 : vector<32x64xf32> to vector<32x64xbf16>
    %c0_60 = arith.constant 0 : index
    %c0_61 = arith.constant 0 : index
    %151 = vector.load %arg9[%c0_60, %c0_61] : memref<64x128xbf16, #tpu.memory_space<vmem>>, vector<64x128xbf16>
    %cst_62 = arith.constant dense<0.000000e+00> : vector<32x128xf32>
    %152 = tpu.matmul %150, %151, %cst_62 {dimension_numbers = #tpu.dot_dimension_numbers<[1], [0], [0], [1], [0, 0, 1, 1], [], []>} : vector<32x64xbf16>, vector<64x128xbf16>, vector<32x128xf32> -> vector<32x128xf32>
    %c0_63 = arith.constant 0 : index
    %c0_64 = arith.constant 0 : index
    %153 = vector.load %arg10[%c0_63, %c0_64] : memref<1x128xf32, #tpu.memory_space<vmem>>, vector<1x128xf32>
    %154 = vector.broadcast %153 : vector<1x128xf32> to vector<32x128xf32>
    %155 = arith.addf %152, %154 : vector<32x128xf32>
    %156 = arith.mulf %155, %155 : vector<32x128xf32>
    %cst_65 = arith.constant 0.0356774069 : f32
    %157 = vector.broadcast %cst_65 : f32 to vector<32x128xf32>
    %158 = arith.mulf %157, %156 : vector<32x128xf32>
    %cst_66 = arith.constant 0.797884583 : f32
    %159 = vector.broadcast %cst_66 : f32 to vector<32x128xf32>
    %160 = arith.addf %159, %158 : vector<32x128xf32>
    %161 = arith.mulf %155, %160 : vector<32x128xf32>
    %cst_67 = arith.constant 5.000000e-01 : f32
    %162 = vector.broadcast %cst_67 : f32 to vector<32x128xf32>
    %163 = arith.mulf %162, %155 : vector<32x128xf32>
    %164 = math.tanh %161 : vector<32x128xf32>
    %cst_68 = arith.constant 1.000000e+00 : f32
    %165 = vector.broadcast %cst_68 : f32 to vector<32x128xf32>
    %166 = arith.addf %165, %164 : vector<32x128xf32>
    %167 = arith.mulf %163, %166 : vector<32x128xf32>
    %168 = arith.truncf %167 : vector<32x128xf32> to vector<32x128xbf16>
    %c0_69 = arith.constant 0 : index
    %c0_70 = arith.constant 0 : index
    %169 = vector.load %arg11[%c0_69, %c0_70] : memref<128x64xbf16, #tpu.memory_space<vmem>>, vector<128x64xbf16>
    %cst_71 = arith.constant dense<0.000000e+00> : vector<32x64xf32>
    %170 = tpu.matmul %168, %169, %cst_71 {dimension_numbers = #tpu.dot_dimension_numbers<[1], [0], [0], [1], [0, 0, 1, 1], [], []>} : vector<32x128xbf16>, vector<128x64xbf16>, vector<32x64xf32> -> vector<32x64xf32>
    %c0_72 = arith.constant 0 : index
    %c0_73 = arith.constant 0 : index
    %171 = vector.load %arg12[%c0_72, %c0_73] : memref<1x64xf32, #tpu.memory_space<vmem>>, vector<1x64xf32>
    %172 = vector.broadcast %171 : vector<1x64xf32> to vector<32x64xf32>
    %173 = arith.addf %170, %172 : vector<32x64xf32>
    %174 = arith.addf %173, %149 : vector<32x64xf32>
    %c0_74 = arith.constant 0 : index
    %c0_75 = arith.constant 0 : index
    %175 = vector.load %arg13[%c0_74, %c0_75] : memref<1x64xf32, #tpu.memory_space<vmem>>, vector<1x64xf32>
    %c0_76 = arith.constant 0 : index
    %c0_77 = arith.constant 0 : index
    %176 = vector.load %arg14[%c0_76, %c0_77] : memref<1x64xf32, #tpu.memory_space<vmem>>, vector<1x64xf32>
    %cst_78 = arith.constant dense<0.000000e+00> : vector<32xf32>
    %177 = vector.multi_reduction <add>, %174, %cst_78 [1] : vector<32x64xf32> to vector<32xf32>
    %178 = vector.shape_cast %177 : vector<32xf32> to vector<32x1xf32>
    %cst_79 = arith.constant 6.400000e+01 : f32
    %179 = vector.broadcast %cst_79 : f32 to vector<32x1xf32>
    %180 = arith.divf %178, %179 : vector<32x1xf32>
    %181 = vector.broadcast %180 : vector<32x1xf32> to vector<32x64xf32>
    %182 = arith.subf %174, %181 : vector<32x64xf32>
    %183 = arith.mulf %182, %182 : vector<32x64xf32>
    %cst_80 = arith.constant dense<0.000000e+00> : vector<32xf32>
    %184 = vector.multi_reduction <add>, %183, %cst_80 [1] : vector<32x64xf32> to vector<32xf32>
    %185 = vector.shape_cast %184 : vector<32xf32> to vector<32x1xf32>
    %cst_81 = arith.constant 6.400000e+01 : f32
    %186 = vector.broadcast %cst_81 : f32 to vector<32x1xf32>
    %187 = arith.divf %185, %186 : vector<32x1xf32>
    %cst_82 = arith.constant 9.99999996E-13 : f32
    %188 = vector.broadcast %cst_82 : f32 to vector<32x1xf32>
    %189 = arith.addf %187, %188 : vector<32x1xf32>
    %190 = math.rsqrt %189 : vector<32x1xf32>
    %191 = vector.broadcast %190 : vector<32x1xf32> to vector<32x64xf32>
    %192 = arith.mulf %182, %191 : vector<32x64xf32>
    %193 = vector.broadcast %175 : vector<1x64xf32> to vector<32x64xf32>
    %194 = arith.mulf %192, %193 : vector<32x64xf32>
    %195 = vector.broadcast %176 : vector<1x64xf32> to vector<32x64xf32>
    %196 = arith.addf %194, %195 : vector<32x64xf32>
    %197 = vector.shape_cast %196 : vector<32x64xf32> to vector<2x16x64xf32>
    %198 = arith.truncf %197 : vector<2x16x64xf32> to vector<2x16x64xbf16>
    %c0_83 = arith.constant 0 : index
    %c0_84 = arith.constant 0 : index
    %c0_85 = arith.constant 0 : index
    %199 = vector.load %arg15[%c0_83, %c0_84, %c0_85] : memref<2x16x64xbf16, #tpu.memory_space<vmem>>, vector<2x16x64xbf16>
    tpu.vector_store %arg15[%c0_83, %c0_84, %c0_85], %198 {strides = array<i32>} : memref<2x16x64xbf16, #tpu.memory_space<vmem>>, vector<2x16x64xbf16>,
    return
  }
  func.func @transform_0(%arg0: i32) -> (i32, i32, i32) {
    %c0_i32 = arith.constant 0 : i32
    %c0_i32_0 = arith.constant 0 : i32
    %c0_i32_1 = arith.constant 0 : i32
    return %arg0, %c0_i32, %c0_i32_0 : i32, i32, i32
  }
  func.func @transform_1(%arg0: i32) -> (i32, i32, i32) {
    %c0_i32 = arith.constant 0 : i32
    %c0_i32_0 = arith.constant 0 : i32
    %c0_i32_1 = arith.constant 0 : i32
    return %arg0, %c0_i32, %c0_i32_0 : i32, i32, i32
  }
  func.func @transform_2(%arg0: i32) -> (i32, i32) {
    %c0_i32 = arith.constant 0 : i32
    %c0_i32_0 = arith.constant 0 : i32
    %c0_i32_1 = arith.constant 0 : i32
    return %c0_i32, %c0_i32_0 : i32, i32
  }
  func.func @transform_3(%arg0: i32) -> (i32, i32) {
    %c0_i32 = arith.constant 0 : i32
    %c0_i32_0 = arith.constant 0 : i32
    %c0_i32_1 = arith.constant 0 : i32
    return %c0_i32, %c0_i32_0 : i32, i32
  }
  func.func @transform_4(%arg0: i32) -> (i32, i32) {
    %c0_i32 = arith.constant 0 : i32
    %c0_i32_0 = arith.constant 0 : i32
    %c0_i32_1 = arith.constant 0 : i32
    return %c0_i32, %c0_i32_0 : i32, i32
  }
  func.func @transform_5(%arg0: i32) -> (i32, i32) {
    %c0_i32 = arith.constant 0 : i32
    %c0_i32_0 = arith.constant 0 : i32
    %c0_i32_1 = arith.constant 0 : i32
    return %c0_i32, %c0_i32_0 : i32, i32
  }
  func.func @transform_6(%arg0: i32) -> (i32, i32) {
    %c0_i32 = arith.constant 0 : i32
    %c0_i32_0 = arith.constant 0 : i32
    %c0_i32_1 = arith.constant 0 : i32
    return %c0_i32, %c0_i32_0 : i32, i32
  }
  func.func @transform_7(%arg0: i32) -> (i32, i32) {
    %c0_i32 = arith.constant 0 : i32
    %c0_i32_0 = arith.constant 0 : i32
    %c0_i32_1 = arith.constant 0 : i32
    return %c0_i32, %c0_i32_0 : i32, i32
  }
  func.func @transform_8(%arg0: i32) -> (i32, i32) {
    %c0_i32 = arith.constant 0 : i32
    %c0_i32_0 = arith.constant 0 : i32
    %c0_i32_1 = arith.constant 0 : i32
    return %c0_i32, %c0_i32_0 : i32, i32
  }
  func.func @transform_9(%arg0: i32) -> (i32, i32) {
    %c0_i32 = arith.constant 0 : i32
    %c0_i32_0 = arith.constant 0 : i32
    %c0_i32_1 = arith.constant 0 : i32
    return %c0_i32, %c0_i32_0 : i32, i32
  }
  func.func @transform_10(%arg0: i32) -> (i32, i32) {
    %c0_i32 = arith.constant 0 : i32
    %c0_i32_0 = arith.constant 0 : i32
    %c0_i32_1 = arith.constant 0 : i32
    return %c0_i32, %c0_i32_0 : i32, i32
  }
  func.func @transform_11(%arg0: i32) -> (i32, i32) {
    %c0_i32 = arith.constant 0 : i32
    %c0_i32_0 = arith.constant 0 : i32
    %c0_i32_1 = arith.constant 0 : i32
    return %c0_i32, %c0_i32_0 : i32, i32
  }
  func.func @transform_12(%arg0: i32) -> (i32, i32) {
    %c0_i32 = arith.constant 0 : i32
    %c0_i32_0 = arith.constant 0 : i32
    %c0_i32_1 = arith.constant 0 : i32
    return %c0_i32, %c0_i32_0 : i32, i32
  }
  func.func @transform_13(%arg0: i32) -> (i32, i32) {
    %c0_i32 = arith.constant 0 : i32
    %c0_i32_0 = arith.constant 0 : i32
    %c0_i32_1 = arith.constant 0 : i32
    return %c0_i32, %c0_i32_0 : i32, i32
  }
  func.func @transform_14(%arg0: i32) -> (i32, i32, i32) {
    %c0_i32 = arith.constant 0 : i32
    %c0_i32_0 = arith.constant 0 : i32
    %c0_i32_1 = arith.constant 0 : i32
    return %arg0, %c0_i32, %c0_i32_0 : i32, i32, i32
  }
  func.func @transform_15(%arg0: i32) -> (i32, i32, i32, i32) {
    %c0_i32 = arith.constant 0 : i32
    %c0_i32_0 = arith.constant 0 : i32
    %c0_i32_1 = arith.constant 0 : i32
    %c0_i32_2 = arith.constant 0 : i32
    return %arg0, %c0_i32, %c0_i32_0, %c0_i32_1 : i32, i32, i32, i32
  }
}

</mosaic_0001>

<bundles_post_ra>
// kernel: bigbird_classifier_forward.4
= control target key start
LH: loop header
LB: loop body
LE: loop exit
PB: predicated region body
PF: predicated region fallthrough
CT: control target
= control target key end

     0   :  { %vm38_vm0 = vcmask 523264   ;;  %v176_v22 = vmov 64.0   ;;  %vm154_vm10 = vcmask 519168   ;;  %s287_s0 = inlined_call_operand.vmem [shape: f32[2,16,64], index: 0, kind: input, shape index: {}]   ;;  %s288_s1 = inlined_call_operand.vmem [shape: f32[1,16,64], index: 1, kind: input, shape index: {}]   ;;  %s289_s2 = inlined_call_operand.vmem [shape: f32[2,16,64], index: 2, kind: input, shape index: {}]   ;;  %s290_s3 = inlined_call_operand.vmem [shape: f32[1,1,64], index: 3, kind: input, shape index: {}]   ;;  %s291_s4 = inlined_call_operand.vmem [shape: f32[1,1,64], index: 4, kind: input, shape index: {}]   ;;  %s292_s5 = inlined_call_operand.vmem [shape: bf16[2,16,64], index: 5, kind: output, shape index: {}]  }
   0x1   :  { %v22_v0 = vld [vmem:[%s287_s0 + $0x10] sm:$0xff]  ;;  %v24_v1 = vld [vmem:[%s288_s1] sm:$0xff]  ;;  %v23_v6 = vld [vmem:[%s287_s0 + $0x18] sm:$0xff]  ;;  %166 = vrcp.f32 %v176_v22 }
   0x2   :  { %v32_v2 = vld [vmem:[%s289_s2 + $0x10] sm:$0xff]  ;;  %v28_v3 = vadd.f32 %v24_v1, %v22_v0  ;;  %v20_v4 = vld [vmem:[%s287_s0] sm:$0xff]  ;;  %v25_v8 = vld [vmem:[%s288_s1 + $0x8] sm:$0xff] }
   0x3   :  { %v30_v5 = vld [vmem:[%s289_s2] sm:$0xff]  ;;  %v26_v7 = vadd.f32 %v24_v1, %v20_v4  ;;  %v21_v9 = vld [vmem:[%s287_s0 + $0x8] sm:$0xff]  ;;  %v29_v11 = vadd.f32 %v25_v8, %v23_v6  ;;  %v33_v13 = vld [vmem:[%s289_s2 + $0x18] sm:$0xff] }
   0x4   :  { %v36_v10 = vadd.f32 %v32_v2, %v28_v3  ;;  %v27_v14 = vadd.f32 %v25_v8, %v21_v9  ;;  %v31_v16 = vld [vmem:[%s289_s2 + $0x8] sm:$0xff] }
   0x5   :  { %v34_v12 = vadd.f32 %v30_v5, %v26_v7  ;;  %v37_v18 = vadd.f32 %v33_v13, %v29_v11  ;;  %v164_v11 = vld [vmem:[%s290_s3] ss:$0 sm:$0xff] }
   0x6   :  { %v45_v15 = vsel %vm38_vm0, %v36_v10, 0.0  ;;  %v35_v19 = vadd.f32 %v31_v16, %v27_v14  ;;  %v165_v16 = vld [vmem:[%s291_s4] ss:$0 sm:$0xff] }
   0x7   :  { %46 = vadd.xlane.f32.xlu1 %v45_v15  ;;  %v39_v17 = vsel %vm38_vm0, %v34_v12, 0.0  ;;  %v48_v20 = vsel %vm38_vm0, %v37_v18, 0.0  ;;  %v167_v23 = vpop.eup %166 }
   0x8   :  { %40 = vadd.xlane.f32.xlu0 %v39_v17  ;;  %v42_v21 = vsel %vm38_vm0, %v35_v19, 0.0  ;;  %v52_v24 = vmul.f32 64.0, %v167_v23  ;;  %vm56_vm1 = vweird.f32 %v167_v23 }
   0xa   :  { %v53_v25 = vsub.f32 1.0, %v52_v24 }
   0xc   :  { %v54_v26 = vmul.f32 %v167_v23, %v53_v25 }
   0xe   :  { %v55_v27 = vadd.f32 %v167_v23, %v54_v26 }
   0xf   :  { %49 = vadd.xlane.f32.xlu1 %v48_v20 }
  0x10   :  { %43 = vadd.xlane.f32.xlu0 %v42_v21  ;;  %v57_v28 = vsel %vm56_vm1, %v167_v23, %v55_v27 }
  0x7a   :  { %v47_v29 = vpop.xlane.xlu1 %46 }
  0x7b   :  { %v60_v30 = vmul.f32 %v57_v28, %v47_v29  ;;  %v41_v31 = vpop.xlane.xlu0 %40 }
  0x7c   :  { %v58_v32 = vmul.f32 %v57_v28, %v41_v31 }
  0x7d   :  { %v241_v33 = vsub.f32 %v36_v10, %v60_v30 }
  0x7e   :  { %v243_v34 = vsub.f32 %v34_v12, %v58_v32 }
  0x7f   :  { %v68_v35 = vmul.f32 %v241_v33, %v241_v33 }
  0x80   :  { %v66_v36 = vmul.f32 %v243_v34, %v243_v34 }
  0x81   :  { %v76_v37 = vsel %vm38_vm0, %v68_v35, 0.0 }
  0x82   :  { %v50_v38 = vpop.xlane.xlu1 %49  ;;  %77 = vadd.xlane.f32.xlu0 %v76_v37  ;;  %v70_v39 = vsel %vm38_vm0, %v66_v36, 0.0 }
  0x83   :  { %v61_v40 = vmul.f32 %v57_v28, %v50_v38  ;;  %71 = vadd.xlane.f32.xlu2 %v70_v39  ;;  %v44_v41 = vpop.xlane.xlu0 %43 }
  0x84   :  { %v59_v42 = vmul.f32 %v57_v28, %v44_v41 }
  0x85   :  { %v251_v43 = vsub.f32 %v37_v18, %v61_v40 }
  0x86   :  { %v253_v44 = vsub.f32 %v35_v19, %v59_v42 }
  0x87   :  { %v69_v45 = vmul.f32 %v251_v43, %v251_v43 }
  0x88   :  { %v67_v46 = vmul.f32 %v253_v44, %v253_v44 }
  0x89   :  { %v79_v47 = vsel %vm38_vm0, %v69_v45, 0.0 }
  0x8a   :  { %80 = vadd.xlane.f32.xlu1 %v79_v47  ;;  %v73_v48 = vsel %vm38_vm0, %v67_v46, 0.0 }
  0x8b   :  { %74 = vadd.xlane.f32.xlu2 %v73_v48 }
  0xf5   :  { %v78_v49 = vpop.xlane.xlu0 %77 }
  0xf6   :  { %v72_v50 = vpop.xlane.xlu2 %71  ;;  %v84_v51 = vmul.f32 %v78_v49, %v57_v28 }
  0xf7   :  { %v82_v52 = vmul.f32 %v72_v50, %v57_v28 }
  0xf8   :  { %v88_v53 = vadd.f32 1e-12, %v84_v51 }
  0xf9   :  { %v86_v54 = vadd.f32 1e-12, %v82_v52 }
  0xfa   :  { %168 = vrsqrt.f32 %v88_v53  ;;  %vm116_vm4 = vweird.f32 %v88_v53 }
  0xfb   :  { %170 = vrsqrt.f32 %v86_v54  ;;  %vm96_vm5 = vweird.f32 %v86_v54 }
  0xfd   :  { %v81_v55 = vpop.xlane.xlu1 %80 }
  0xfe   :  { %v85_v56 = vmul.f32 %v81_v55, %v57_v28  ;;  %v75_v57 = vpop.xlane.xlu2 %74 }
  0xff   :  { %v83_v58 = vmul.f32 %v75_v57, %v57_v28 }
 0x100   :  { %v169_v59 = vpop.eup %168  ;;  %v89_v60 = vadd.f32 1e-12, %v85_v56 }
 0x101   :  { %v171_v61 = vpop.eup %170  ;;  %v111_v62 = vmul.f32 %v169_v59, %v88_v53  ;;  %v87_v63 = vadd.f32 1e-12, %v83_v58  ;;  %vm117_vm2 = vweird.f32 %v169_v59 }
 0x102   :  { %v91_v0 = vmul.f32 %v171_v61, %v86_v54  ;;  %172 = vrsqrt.f32 %v89_v60  ;;  %vm97_vm3 = vweird.f32 %v171_v61  ;;  %vm118_vm6 = vmor %vm116_vm4, %vm117_vm2  ;;  %vm126_vm11 = vweird.f32 %v89_v60 }
 0x103   :  { %v112_v1 = vmul.f32 %v169_v59, %v111_v62  ;;  %174 = vrsqrt.f32 %v87_v63  ;;  %vm98_vm7 = vmor %vm96_vm5, %vm97_vm3  ;;  %vm106_vm13 = vweird.f32 %v87_v63 }
 0x104   :  { %v92_v2 = vmul.f32 %v171_v61, %v91_v0 }
 0x105   :  { %v113_v3 = vmul.f32 0.5, %v112_v1 }
 0x106   :  { %v93_v4 = vmul.f32 0.5, %v92_v2 }
 0x107   :  { %v114_v5 = vsub.f32 1.5, %v113_v3 }
 0x108   :  { %v173_v6 = vpop.eup %172  ;;  %v94_v7 = vsub.f32 1.5, %v93_v4 }
 0x109   :  { %v175_v8 = vpop.eup %174  ;;  %v115_v9 = vmul.f32 %v169_v59, %v114_v5  ;;  %v121_v10 = vmul.f32 %v173_v6, %v89_v60  ;;  %vm127_vm8 = vweird.f32 %v173_v6 }
 0x10a   :  { %v95_v12 = vmul.f32 %v171_v61, %v94_v7  ;;  %v101_v13 = vmul.f32 %v175_v8, %v87_v63  ;;  %vm107_vm9 = vweird.f32 %v175_v8  ;;  %vm128_vm12 = vmor %vm126_vm11, %vm127_vm8 }
 0x10b   :  { %v119_v14 = vsel %vm118_vm6, %v169_v59, %v115_v9  ;;  %v122_v15 = vmul.f32 %v173_v6, %v121_v10  ;;  %vm108_vm14 = vmor %vm106_vm13, %vm107_vm9 }
 0x10c   :  { %v99_v17 = vsel %vm98_vm7, %v171_v61, %v95_v12  ;;  %v132_v18 = vmul.f32 %v119_v14, %v241_v33  ;;  %v102_v19 = vmul.f32 %v175_v8, %v101_v13 }
 0x10d   :  { %v130_v20 = vmul.f32 %v99_v17, %v243_v34  ;;  %v123_v21 = vmul.f32 0.5, %v122_v15 }
 0x10e   :  { %v140_v22 = vmul.f32 %v164_v11, %v132_v18  ;;  %v103_v23 = vmul.f32 0.5, %v102_v19 }
 0x10f   :  { %v138_v24 = vmul.f32 %v164_v11, %v130_v20  ;;  %v124_v25 = vsub.f32 1.5, %v123_v21 }
 0x110   :  { %v148_v26 = vadd.f32 %v165_v16, %v140_v22  ;;  %v104_v27 = vsub.f32 1.5, %v103_v23 }
 0x111   :  { %v146_v28 = vadd.f32 %v165_v16, %v138_v24  ;;  %v125_v29 = vmul.f32 %v173_v6, %v124_v25 }
 0x112   :  { %v152_v30 = vpack.c.bf16 %v148_v26, %v148_v26  ;;  %v105_v31 = vmul.f32 %v175_v8, %v104_v27 }
 0x113   :  { %v150_v32 = vpack.c.bf16 %v146_v28, %v146_v28  ;;  %v129_v33 = vsel %vm128_vm12, %v173_v6, %v125_v29 }
 0x114   :  { %157 = vst.msk [vmem:[%s292_s5 + $0x8] sm:$0xf] %vm154_vm10, %v152_v30  ;;  %v133_v34 = vmul.f32 %v129_v33, %v251_v43  ;;  %v109_v35 = vsel %vm108_vm14, %v175_v8, %v105_v31 }
 0x115   :  { %155 = vst.msk [vmem:[%s292_s5] sm:$0xf] %vm154_vm10, %v150_v32  ;;  %v131_v36 = vmul.f32 %v109_v35, %v253_v44 }
 0x116   :  { %v141_v37 = vmul.f32 %v164_v11, %v133_v34 }
 0x117   :  { %v139_v38 = vmul.f32 %v164_v11, %v131_v36 }
 0x118   :  { %v149_v39 = vadd.f32 %v165_v16, %v141_v37 }
 0x119   :  { %v147_v40 = vadd.f32 %v165_v16, %v139_v38 }
 0x11a   :  { %v153_v41 = vpack.c.bf16 %v149_v39, %v149_v39 }
 0x11b   :  { %v151_v42 = vpack.c.bf16 %v147_v40, %v147_v40 }
 0x11c   :  { %158 = vst.msk [vmem:[%s292_s5 + $0xc] sm:$0xf] %vm154_vm10, %v153_v41 }
 0x11d   :  { %156 = vst.msk [vmem:[%s292_s5 + $0x4] sm:$0xf] %vm154_vm10, %v151_v42 }

// kernel: bigbird_classifier_forward.7
= control target key start
LH: loop header
LB: loop body
LE: loop exit
PB: predicated region body
PF: predicated region fallthrough
CT: control target
= control target key end

     0   :  { %s288_s0 = inlined_call_operand.vmem [shape: bf16[2,64], index: 0, kind: input, shape index: {}]   ;;  %s289_s1 = inlined_call_operand.vmem [shape: bf16[64,64], index: 1, kind: input, shape index: {}]   ;;  %s290_s2 = inlined_call_operand.vmem [shape: f32[1,64], index: 2, kind: input, shape index: {}]   ;;  %s291_s3 = inlined_call_operand.vmem [shape: bf16[64,4], index: 3, kind: input, shape index: {}]   ;;  %s292_s4 = inlined_call_operand.vmem [shape: f32[1,4], index: 4, kind: input, shape index: {}]   ;;  %s293_s5 = inlined_call_operand.hbm [shape: f32[2,4], index: 5, kind: output, shape index: {}]  }
   0x1   :  { %v185_v0 = vld [vmem:[%s289_s1 + $0x18] sm:$0xff]  ;;  %v184_v2 = vld [vmem:[%s289_s1 + $0x10] sm:$0xff] }
   0x2   :  { %v189_v1 = vld [vmem:[%s291_s3 + $0x18] sm:$0xff]  ;;  %67 = vmatpush.bf16.msra.mxu0 %v185_v0 }
   0x3   :  { %121 = vmatpush.bf16.msra.mxu1 %v189_v1 }
   0x4   :  { %10 = vsyncpa [#allocation3], 0  ;;  %v183_v3 = vld [vmem:[%s289_s1 + $0x8] sm:$0xff]  ;;  %v182_v4 = vld [vmem:[%s289_s1] sm:$0xff]  ;;  %vm59_vm0 = vcmask 523264   ;;  %s221_s13 = smov [#allocation2]  }
   0x5   :  { %v22_v5 = vld [vmem:[%s288_s0] sm:$0x1]  ;;  %v188_v6 = vld [vmem:[%s291_s3 + $0x10] sm:$0xff]  ;;  %v187_v7 = vld [vmem:[%s291_s3 + $0x8] sm:$0xff]  ;;  %s137_s14 = sshll.u32 %s221_s13, 4  ;;  %s139_s16 = sshll.u32 %s293_s5, 4  ;;  %s138_s14 = int_to_ptr.vmem [resolvable:$true] %s137_s14  ;;  %s140_s16 = int_to_ptr.hbm [resolvable:$true] %s139_s16 }
   0x6   :  { %68 = vmatpush.bf16.msra.mxu0 %v184_v2  ;;  %v186_v8 = vld [vmem:[%s291_s3] sm:$0xff]  ;;  %vm130_vm1 = vcmask 25600  }
   0x7   :  { %122 = vmatpush.bf16.msra.mxu1 %v188_v6  ;;  %v191_v9 = vld [vmem:[%s290_s2] ss:$0 sm:$0xff] }
   0x8   :  { %v192_v15 = vld [vmem:[%s292_s4] ss:$0 sm:$0xff] }
   0xa   :  { %69 = vmatpush.bf16.msra.mxu0 %v183_v3 }
   0xb   :  { %123 = vmatpush.bf16.msra.mxu1 %v187_v7 }
   0xe   :  { %70 = vmatpush.bf16.msra.mxu0 %v182_v4 }
   0xf   :  { %124 = vmatpush.bf16.msra.mxu1 %v186_v8 }
  0x11   :  { %164 = vmatmul.msk.bf16.vlgmr.msra.gmra.mxu0 %vm59_vm0, %v22_v5 }
  0x8e   :  { %v72_v10 = vpop.f32.mrf.mxu0 }
  0x8f   :  { %v73_v11 = vadd.f32 %v191_v9, %v72_v10 }
  0x91   :  { %193 = vtanh.f32 %v73_v11 }
  0x96   :  { %v74_v12 = vpop.f32.mrf.mxu0 }
  0x97   :  { %v194_v13 = vpop.eup %193 }
  0x98   :  { %v77_v14 = vpack.c.bf16 %v194_v13, %v194_v13 }
  0x9a   :  { %181 = vmatmul.msk.bf16.vlgmr.msra.gmra.mxu1 %vm59_vm0, %v77_v14 }
 0x117   :  { %v126_v16 = vpop.f32.mrf.mxu1 }
 0x118   :  { %v127_v17 = vadd.f32 %v192_v15, %v126_v16 }
 0x11a   :  { %131 = vst.msk [vmem:[#allocation2] sm:$0x3] %vm130_vm1, %v127_v17 }
 0x11b   :  { %142 = dma.vmem_to_hbm [thread:$0]  %s138_s14, 32, %s140_s16, [#allocation3]  }
 0x11f   :  { %v128_v18 = vpop.f32.mrf.mxu1 }
 0x120   :  { %219 = dma.done.wait [#allocation3], 32  }
 0x121   :  { %220 = vsyncadd [#allocation3], 4294967264 }
 0x122   :  { %147 = vsyncpa [#allocation3], 1 }

// kernel: bigbird_classifier_forward.5
= control target key start
LH: loop header
LB: loop body
LE: loop exit
PB: predicated region body
PF: predicated region fallthrough
CT: control target
= control target key end

     0   :  { %s1870_s0 = inlined_call_operand.vmem [shape: bf16[2,16,64], index: 0, kind: input, shape index: {}]   ;;  %s1871_s1 = inlined_call_operand.vmem [shape: f32[2,1,16], index: 1, kind: input, shape index: {}]   ;;  %s1872_s2 = inlined_call_operand.vmem [shape: bf16[64,192], index: 2, kind: input, shape index: {}]   ;;  %s1873_s3 = inlined_call_operand.vmem [shape: f32[1,192], index: 3, kind: input, shape index: {}]   ;;  %s1874_s4 = inlined_call_operand.vmem [shape: bf16[64,64], index: 4, kind: input, shape index: {}]   ;;  %s1875_s5 = inlined_call_operand.vmem [shape: f32[1,64], index: 5, kind: input, shape index: {}]   ;;  %s1876_s6 = inlined_call_operand.vmem [shape: f32[1,64], index: 6, kind: input, shape index: {}]   ;;  %s1877_s7 = inlined_call_operand.vmem [shape: f32[1,64], index: 7, kind: input, shape index: {}]   ;;  %s1878_s8 = inlined_call_operand.vmem [shape: bf16[64,128], index: 8, kind: input, shape index: {}]   ;;  %s1879_s9 = inlined_call_operand.vmem [shape: f32[1,128], index: 9, kind: input, shape index: {}]   ;;  %s1880_s10 = inlined_call_operand.vmem [shape: bf16[128,64], index: 10, kind: input, shape index: {}]   ;;  %s1881_s11 = inlined_call_operand.vmem [shape: f32[1,64], index: 11, kind: input, shape index: {}]   ;;  %s1882_s12 = inlined_call_operand.vmem [shape: f32[1,64], index: 12, kind: input, shape index: {}]   ;;  %s1883_s13 = inlined_call_operand.vmem [shape: f32[1,64], index: 13, kind: input, shape index: {}]   ;;  %s1884_s14 = inlined_call_operand.vmem [shape: bf16[2,16,64], index: 14, kind: output, shape index: {0}]   ;;  %s1885_s15 = inlined_call_operand.hbm [shape: bf16[2,2,16,16], index: 15, kind: output, shape index: {1}]  }
   0x1   :  { %v1169_v0 = vld [vmem:[%s1872_s2 + $0x30] sm:$0xf]  ;;  %v1267_v1 = vld [vmem:[%s1872_s2 + $0x34] sm:$0xf0]  ;;  %v1161_v2 = vld [vmem:[%s1872_s2 + $0x20] sm:$0xf] }
   0x2   :  { %v1170_v3 = vor.u32 %v1267_v1, %v1169_v0  ;;  %v1265_v4 = vld [vmem:[%s1872_s2 + $0x24] sm:$0xf0]  ;;  %v1153_v6 = vld [vmem:[%s1872_s2 + $0x10] sm:$0xf]  ;;  %v1263_v7 = vld [vmem:[%s1872_s2 + $0x14] sm:$0xf0] }
   0x3   :  { %v1162_v5 = vor.u32 %v1265_v4, %v1161_v2 }
   0x4   :  { %134 = vmatpush.bf16.msra.mxu0 %v1170_v3 }
   0x5   :  { %21 = vsyncpa [#allocation3], 0  ;;  %v1154_v8 = vor.u32 %v1263_v7, %v1153_v6  ;;  %v1145_v9 = vld [vmem:[%s1872_s2] sm:$0xf]  ;;  %v1261_v10 = vld [vmem:[%s1872_s2 + $0x4] sm:$0xf0] }
   0x6   :  { %v1146_v11 = vor.u32 %v1261_v10, %v1145_v9  ;;  %v1258_v12 = vld [vmem:[%s1870_s0] sm:$0xff]  ;;  %vm123_vm0 = vcmask 523264   ;;  %v1259_v13 = vld [vmem:[%s1870_s0 + $0x8] sm:$0xff]  ;;  %s1383_s25 = smov 64   ;;  %vm184_vm1 = vcmask 261120   ;;  %vm205_vm2 = vcmask 130048  }
   0x7   :  { %v67_v15 = vld [vmem:[%s1873_s3] sm:$0x3]  ;;  %v1266_v23 = vld [vmem:[%s1872_s2 + $0x34] sm:$0xf]  ;;  %v1171_v24 = vld [vmem:[%s1872_s2 + $0x38] sm:$0xf0] }
   0x8   :  { %135 = vmatpush.bf16.msra.mxu0 %v1162_v5  ;;  %v1504_v16 = vperm.slane %v67_v15, 0  ;;  %v1264_v25 = vld [vmem:[%s1872_s2 + $0x24] sm:$0xf]  ;;  %v1174_v26 = vor.u32 %v1266_v23, %v1171_v24  ;;  %v1163_v27 = vld [vmem:[%s1872_s2 + $0x28] sm:$0xf0]  ;;  %s1385_s28 = smov 32  }
   0x9   :  { %v1166_v29 = vor.u32 %v1264_v25, %v1163_v27  ;;  %v1262_v30 = vld [vmem:[%s1872_s2 + $0x14] sm:$0xf]  ;;  %v1155_v31 = vld [vmem:[%s1872_s2 + $0x18] sm:$0xf0]  ;;  %v1536_v34 = vld [vmem:[%s1871_s1] ss:$0 sm:$0xff] }
   0xa   :  { %153 = vmatpush.bf16.msra.mxu1 %v1174_v26  ;;  %v1158_v32 = vor.u32 %v1262_v30, %v1155_v31  ;;  %v1260_v41 = vld [vmem:[%s1872_s2 + $0x4] sm:$0xf]  ;;  %v1147_v42 = vld [vmem:[%s1872_s2 + $0x8] sm:$0xf0]  ;;  %s1384_s2 = smov 96   ;;  %v1554_v55 = vperm.slane %v67_v15, 1 }
   0xb   :  { %v1150_v43 = vor.u32 %v1260_v41, %v1147_v42  ;;  %vm256_vm7 = vcmask 125952   ;;  %v1569_v30 = vld [vmem:[%s1874_s4 + $0x8] sm:$0xff]  ;;  %v1575_v31 = vld [vmem:[%s1874_s4] sm:$0xff]  ;;  %s1387_s21 = smov [#allocation2]  }
   0xc   :  { %136 = vmatpush.bf16.msra.mxu0 %v1154_v8  ;;  %437 = vmatpush.bf16.msra.mxu2 %v1569_v30 }
   0xe   :  { %154 = vmatpush.bf16.msra.mxu1 %v1166_v29 }
  0x10   :  { %137 = vmatpush.bf16.msra.mxu0 %v1146_v11  ;;  %438 = vmatpush.bf16.msra.mxu2 %v1575_v31 }
  0x12   :  { %155 = vmatpush.bf16.msra.mxu1 %v1158_v32 }
  0x13   :  { %1175 = vmatmul.msk.bf16.vlgmr.msra.gmra.mxu0 %vm123_vm0, %v1258_v12 }
  0x16   :  { %156 = vmatpush.bf16.msra.mxu1 %v1150_v43 }
  0x19   :  { %1177 = vmatmul.msk.bf16.vlgmr.msra.gmra.mxu1 %vm123_vm0, %v1258_v12 }
  0x23   :  { %1176 = vmatmul.msk.bf16.gmra.mxu0 %vm123_vm0, %v1259_v13 }
  0x29   :  { %1178 = vmatmul.msk.bf16.gmra.mxu1 %vm123_vm0, %v1259_v13 }
  0x90   :  { %v139_v14 = vpop.f32.mrf.mxu0 }
  0x91   :  { %v140_v18 = vadd.f32 %v139_v14, %v1504_v16 }
  0x96   :  { %v158_v54 = vpop.f32.mrf.mxu1 }
  0x97   :  { %v159_v57 = vadd.f32 %v158_v54, %v1554_v55 }
  0x98   :  { %v141_v17 = vpop.f32.mrf.mxu0 }
  0x99   :  { %v142_v19 = vadd.f32 %v141_v17, %v1504_v16 }
  0x9b   :  { %v177_v20 = vpack.c.bf16 %v142_v19, %v140_v18 }
  0x9d   :  { %182 = vrot.lane.b32.xlu0 %v177_v20, %s1383_s25 }
  0x9e   :  { %v160_v56 = vpop.f32.mrf.mxu1 }
  0x9f   :  { %v161_v58 = vadd.f32 %v160_v56, %v1554_v55 }
  0xa0   :  { %v1523_v28 = vpop.f32.mrf.mxu0 }
  0xa1   :  { %v1558_v59 = vpack.c.bf16 %v161_v58, %v159_v57  ;;  %v145_v43 = vadd.f32 %v1523_v28, %v1504_v16  ;;  %v1602_v28 = vld [vmem:[%s1874_s4 + $0x10] sm:$0xff] }
  0xa3   :  { %275 = vmatpush.bf16.msra.mxu3 %v1558_v59 }
  0xa8   :  { %v1531_v33 = vpop.f32.mrf.mxu0 }
 0x10f   :  { %v183_v21 = vpop.permute.xlu0 %182 }
 0x110   :  { %v189_v22 = vsel %vm184_vm1, %v183_v21, 0 }
 0x111   :  { %198 = vmatpush.bf16.xpose.msrb.mxu0 %v189_v22 }
 0x118   :  { %1179 = vmatmul.msk.bf16.vlgmr.msrb.gmra.mxu0 %vm184_vm1, %v177_v20 }
 0x195   :  { %v200_v35 = vpop.f32.mrf.mxu0 }
 0x196   :  { %v201_v36 = vadd.f32 %v1536_v34, %v200_v35 }
 0x198   :  { %v206_v37 = vsel %vm205_vm2, %v201_v36, -inf }
 0x199   :  { %207 = vmax.xlane.f32.xlu0 %v206_v37 }
 0x19d   :  { %v202_v38 = vpop.f32.mrf.mxu0 }
 0x19e   :  { %v203_v39 = vadd.f32 %v1536_v34, %v202_v38 }
 0x1a0   :  { %v209_v40 = vsel %vm205_vm2, %v203_v39, -inf }
 0x1a1   :  { %210 = vmax.xlane.f32.xlu1 %v209_v40 }
 0x20c   :  { %v208_v44 = vpop.xlane.xlu0 %207 }
 0x20d   :  { %v212_v45 = vsub.f32 %v201_v36, %v208_v44  ;;  %v147_v44 = vadd.f32 %v1531_v33, %v1504_v16 }
 0x20f   :  { %v214_v46 = vmul.f32 1.442695, %v212_v45  ;;  %v1587_v45 = vpack.c.bf16 %v147_v44, %v145_v43 }
 0x211   :  { %1299 = vpow2.f32 %v214_v46 }
 0x214   :  { %v211_v47 = vpop.xlane.xlu1 %210 }
 0x215   :  { %v213_v48 = vsub.f32 %v203_v39, %v211_v47 }
 0x217   :  { %v1300_v49 = vpop.eup %1299  ;;  %v216_v50 = vmul.f32 1.442695, %v213_v48 }
 0x218   :  { %v218_v51 = vsel %vm205_vm2, %v1300_v49, 0.0 }
 0x219   :  { %1301 = vpow2.f32 %v216_v50  ;;  %219 = vadd.xlane.f32.xlu1 %v218_v51 }
 0x21f   :  { %v1302_v52 = vpop.eup %1301 }
 0x220   :  { %v221_v53 = vsel %vm205_vm2, %v1302_v52, 0.0 }
 0x221   :  { %222 = vadd.xlane.f32.xlu2 %v221_v53 }
 0x232   :  { %283 = vrot.lane.b32.xlu1 %v177_v20, %s1384_s2 }
 0x239   :  { %285 = vrot.lane.b32.xlu2 %v177_v20, %s1385_s28 }
 0x28c   :  { %v220_v60 = vpop.xlane.xlu1 %219 }
 0x28d   :  { %1303 = vrcp.f32 %v220_v60  ;;  %v235_v1 = vand.u32 2147483648, %v220_v60  ;;  %v233_v3 = vand.u32 2147483647, %v220_v60  ;;  %vm229_vm4 = vweird.f32 %v220_v60 }
 0x28f   :  { %v236_v6 = vor.u32 1.1754944e-38, %v235_v1  ;;  %vm234_vm6 = vcmp.eq.f32.partialorder %v233_v3, 8.507059e+37 }
 0x293   :  { %v1304_v61 = vpop.eup %1303 }
 0x294   :  { %v225_v62 = vmul.f32 %v1304_v61, %v220_v60  ;;  %v223_v63 = vpop.xlane.xlu2 %222  ;;  %vm230_vm3 = vweird.f32 %v1304_v61 }
 0x295   :  { %1305 = vrcp.f32 %v223_v63  ;;  %vm231_vm5 = vmor %vm229_vm4, %vm230_vm3  ;;  %v250_v14 = vand.u32 2147483648, %v223_v63  ;;  %v248_v17 = vand.u32 2147483647, %v223_v63  ;;  %vm244_vm9 = vweird.f32 %v223_v63 }
 0x296   :  { %v226_v0 = vsub.f32 1.0, %v225_v62 }
 0x297   :  { %v251_v20 = vor.u32 1.1754944e-38, %v250_v14  ;;  %vm249_vm11 = vcmp.eq.f32.partialorder %v248_v17, 8.507059e+37 }
 0x298   :  { %v227_v2 = vmul.f32 %v1304_v61, %v226_v0 }
 0x29a   :  { %v228_v4 = vadd.f32 %v1304_v61, %v227_v2  ;;  %v163_v2 = vpop.f32.mrf.mxu1 }
 0x29b   :  { %v1306_v5 = vpop.eup %1305 }
 0x29c   :  { %v240_v7 = vmul.f32 %v1306_v5, %v223_v63  ;;  %v286_v8 = vpop.permute.xlu2 %285  ;;  %v232_v9 = vsel %vm231_vm5, %v1304_v61, %v228_v4  ;;  %vm245_vm8 = vweird.f32 %v1306_v5 }
 0x29d   :  { %v291_v10 = vsel %vm184_vm1, %v286_v8, 0  ;;  %v237_v11 = vsel %vm234_vm6, %v236_v6, %v232_v9  ;;  %vm246_vm10 = vmor %vm244_vm9, %vm245_vm8 }
 0x29e   :  { %v241_v12 = vsub.f32 1.0, %v240_v7  ;;  %300 = vmatpush.bf16.xpose.msrb.mxu3 %v291_v10  ;;  %v238_v13 = vmul.f32 %v1300_v49, %v237_v11 }
 0x2a0   :  { %v242_v15 = vmul.f32 %v1306_v5, %v241_v12  ;;  %v254_v18 = vpack.c.bf16 %v238_v13, %v238_v13 }
 0x2a2   :  { %v243_v19 = vadd.f32 %v1306_v5, %v242_v15  ;;  %257 = vst.msk [vmem:[#allocation2] sm:$0xf] %vm256_vm7, %v254_v18  ;;  %v262_v25 = vunpack.c.l.b16 %v254_v18  ;;  %v165_v14 = vpop.f32.mrf.mxu1  ;;  %v164_v15 = vadd.f32 %v163_v2, %v1554_v55 }
 0x2a3   :  { %v166_v17 = vadd.f32 %v165_v14, %v1554_v55 }
 0x2a4   :  { %v247_v21 = vsel %vm246_vm10, %v1306_v5, %v243_v19  ;;  %v284_v29 = vpop.permute.xlu1 %283 }
 0x2a5   :  { %v252_v22 = vsel %vm249_vm11, %v251_v20, %v247_v21 }
 0x2a6   :  { %v253_v23 = vmul.f32 %v1302_v52, %v252_v22  ;;  %v1615_v22 = vpack.c.bf16 %v166_v17, %v164_v15 }
 0x2a8   :  { %v255_v24 = vpack.c.bf16 %v253_v23, %v253_v23 }
 0x2aa   :  { %258 = vst.msk [vmem:[#allocation2 + $0x4] sm:$0xf] %vm256_vm7, %v255_v24  ;;  %v263_v26 = vunpack.c.l.b16 %v255_v24 }
 0x2ac   :  { %v264_v27 = vpack.c.b16 %v263_v26, %v262_v25 }
 0x2ae   :  { %1180 = vmatmul.msk.bf16.vlgmr.msra.gmra.mxu3 %vm205_vm2, %v264_v27 }
 0x2be   :  { %1181 = vmatmul.msk.bf16.vlgmr.msrb.gmra.mxu3 %vm184_vm1, %v284_v29 }
 0x331   :  { %v277_v32 = vpop.f32.mrf.mxu3 }
 0x339   :  { %v279_v35 = vpop.f32.mrf.mxu3 }
 0x33a   :  { %v282_v36 = vpack.c.bf16 %v279_v35, %v277_v32 }
 0x33c   :  { %1200 = vmatmul.msk.bf16.vlgmr.msra.gmra.mxu2 %vm184_vm1, %v282_v36  ;;  %v1291_v36 = vld [vmem:[%s1871_s1 + $0x1] ss:$0 sm:$0xff] }
 0x341   :  { %v302_v37 = vpop.f32.mrf.mxu3 }
 0x342   :  { %v303_v38 = vadd.f32 %v1536_v34, %v302_v37 }
 0x344   :  { %v307_v39 = vsel %vm205_vm2, %v303_v38, -inf }
 0x345   :  { %308 = vmax.xlane.f32.xlu2 %v307_v39 }
 0x349   :  { %v304_v40 = vpop.f32.mrf.mxu3 }
 0x34a   :  { %v305_v41 = vadd.f32 %v1536_v34, %v304_v40  ;;  %v1596_v34 = vld [vmem:[%s1874_s4 + $0x18] sm:$0xff]  ;;  %s1119_s4 = sshll.u32 %s1387_s21, 4  ;;  %s1120_s4 = int_to_ptr.vmem [resolvable:$true] %s1119_s4 }
 0x34b   :  { %408 = vmatpush.bf16.msra.mxu3 %v1596_v34 }
 0x34c   :  { %v310_v42 = vsel %vm205_vm2, %v305_v41, -inf }
 0x34d   :  { %311 = vmax.xlane.f32.xlu1 %v310_v42 }
 0x34f   :  { %409 = vmatpush.bf16.msra.mxu3 %v1602_v28 }
 0x35d   :  { %553 = vrot.lane.b32.xlu2 %v1587_v45, %s1385_s28 }
 0x366   :  { %551 = vrot.lane.b32.xlu1 %v1587_v45, %s1384_s2 }
 0x3b8   :  { %v309_v16 = vpop.xlane.xlu2 %308 }
 0x3b9   :  { %v313_v33 = vsub.f32 %v303_v38, %v309_v16 }
 0x3bb   :  { %v315_v46 = vmul.f32 1.442695, %v313_v33 }
 0x3bd   :  { %1307 = vpow2.f32 %v315_v46 }
 0x3c0   :  { %v312_v47 = vpop.xlane.xlu1 %311  ;;  %v554_v48 = vpop.permute.xlu2 %553 }
 0x3c1   :  { %v314_v49 = vsub.f32 %v305_v41, %v312_v47  ;;  %v559_v50 = vsel %vm184_vm1, %v554_v48, 0 }
 0x3c2   :  { %568 = vmatpush.bf16.xpose.msrb.mxu3 %v559_v50 }
 0x3c3   :  { %v1308_v51 = vpop.eup %1307  ;;  %v317_v52 = vmul.f32 1.442695, %v314_v49 }
 0x3c4   :  { %v319_v53 = vsel %vm205_vm2, %v1308_v51, 0.0 }
 0x3c5   :  { %1309 = vpow2.f32 %v317_v52  ;;  %320 = vadd.xlane.f32.xlu0 %v319_v53  ;;  %v440_v53 = vpop.f32.mrf.mxu2 }
 0x3cb   :  { %v1310_v54 = vpop.eup %1309 }
 0x3cc   :  { %v322_v56 = vsel %vm205_vm2, %v1310_v54, 0.0 }
 0x3cd   :  { %323 = vadd.xlane.f32.xlu0 %v322_v56 }
 0x3e1   :  { %366 = vrot.lane.b32.xlu0 %v1558_v59, %s1384_s2 }
 0x3e9   :  { %452 = vrot.lane.b32.xlu0 %v1587_v45, %s1383_s25 }
 0x438   :  { %v321_v57 = vpop.xlane.xlu0 %320 }
 0x439   :  { %1311 = vrcp.f32 %v321_v57  ;;  %v336_v63 = vand.u32 2147483648, %v321_v57  ;;  %v334_v1 = vand.u32 2147483647, %v321_v57  ;;  %vm330_vm13 = vweird.f32 %v321_v57 }
 0x43b   :  { %v337_v59 = vor.u32 1.1754944e-38, %v336_v63  ;;  %vm335_vm15 = vcmp.eq.f32.partialorder %v334_v1, 8.507059e+37  ;;  %v442_v1 = vpop.f32.mrf.mxu2 }
 0x43f   :  { %v1312_v58 = vpop.eup %1311 }
 0x440   :  { %v326_v60 = vmul.f32 %v1312_v58, %v321_v57  ;;  %v324_v61 = vpop.xlane.xlu0 %323  ;;  %vm331_vm12 = vweird.f32 %v1312_v58 }
 0x441   :  { %1313 = vrcp.f32 %v324_v61  ;;  %vm332_vm14 = vmor %vm330_vm13, %vm331_vm12  ;;  %v351_v10 = vand.u32 2147483648, %v324_v61  ;;  %v349_v12 = vand.u32 2147483647, %v324_v61  ;;  %vm345_vm4 = vweird.f32 %v324_v61 }
 0x442   :  { %v327_v62 = vsub.f32 1.0, %v326_v60 }
 0x443   :  { %v352_v19 = vor.u32 1.1754944e-38, %v351_v10  ;;  %vm350_vm6 = vcmp.eq.f32.partialorder %v349_v12, 8.507059e+37 }
 0x444   :  { %v328_v0 = vmul.f32 %v1312_v58, %v327_v62 }
 0x446   :  { %v329_v3 = vadd.f32 %v1312_v58, %v328_v0 }
 0x447   :  { %v1314_v4 = vpop.eup %1313 }
 0x448   :  { %v333_v5 = vsel %vm332_vm14, %v1312_v58, %v329_v3  ;;  %v341_v6 = vmul.f32 %v1314_v4, %v324_v61  ;;  %vm346_vm3 = vweird.f32 %v1314_v4  ;;  %v1643_v3 = vld [vmem:[%s1875_s5] ss:$0 sm:$0xff] }
 0x449   :  { %v338_v7 = vsel %vm335_vm15, %v337_v59, %v333_v5  ;;  %vm347_vm5 = vmor %vm345_vm4, %vm346_vm3  ;;  %v51_v5 = vld [vmem:[%s1870_s0] sm:$0xf] }
 0x44a   :  { %v342_v8 = vsub.f32 1.0, %v341_v6  ;;  %v339_v9 = vmul.f32 %v1308_v51, %v338_v7  ;;  %v1653_v6 = vld [vmem:[%s1870_s0 + $0x4] sm:$0xff]   ;;  %v55_v12 = vunpack.c.l.bf16 %v51_v5 }
 0x44b   :  { %v56_v15 = vunpack.c.l.bf16 %v1653_v6 }
 0x44c   :  { %v343_v11 = vmul.f32 %v1314_v4, %v342_v8  ;;  %v355_v13 = vpack.c.bf16 %v339_v9, %v339_v9 }
 0x44e   :  { %v344_v18 = vadd.f32 %v1314_v4, %v343_v11  ;;  %358 = vst.msk [vmem:[#allocation2 + $0x8] sm:$0xf] %vm256_vm7, %v355_v13  ;;  %v362_v55 = vunpack.c.l.b16 %v355_v13 }
 0x450   :  { %v348_v20 = vsel %vm347_vm5, %v1314_v4, %v344_v18 }
 0x451   :  { %v353_v21 = vsel %vm350_vm6, %v352_v19, %v348_v20 }
 0x452   :  { %v354_v23 = vmul.f32 %v1310_v54, %v353_v21  ;;  %v1386_v21 = vmov 64.0  }
 0x453   :  { %v367_v24 = vpop.permute.xlu0 %366 }
 0x454   :  { %379 = vmatpush.bf16.msrb.mxu1 %v367_v24  ;;  %v356_v25 = vpack.c.bf16 %v354_v23, %v354_v23 }
 0x456   :  { %359 = vst.msk [vmem:[#allocation2 + $0xc] sm:$0xf] %vm256_vm7, %v356_v25  ;;  %v363_v26 = vunpack.c.l.b16 %v356_v25 }
 0x458   :  { %543 = vmatpush.bf16.msra.mxu1 %v1615_v22  ;;  %v364_v27 = vpack.c.b16 %v363_v26, %v362_v55 }
 0x45a   :  { %1182 = vmatmul.msk.bf16.vlgmr.msrb.gmra.mxu1 %vm205_vm2, %v364_v27 }
 0x45b   :  { %v453_v29 = vpop.permute.xlu0 %452 }
 0x45c   :  { %681 = vmatpush.bf16.msrb.mxu1 %v1569_v30  ;;  %v458_v32 = vsel %vm184_vm1, %v453_v29, 0 }
 0x45d   :  { %467 = vmatpush.bf16.xpose.msra.mxu0 %v458_v32 }
 0x460   :  { %682 = vmatpush.bf16.msrb.mxu1 %v1575_v31  ;;  %v552_v31 = vpop.permute.xlu1 %551 }
 0x464   :  { %1202 = vmatmul.msk.bf16.vlgmr.msra.gmra.mxu0 %vm184_vm1, %v1587_v45 }
 0x465   :  { %664 = vmatpush.bf16.msrb.mxu0 %v1596_v34 }
 0x469   :  { %665 = vmatpush.bf16.msrb.mxu0 %v1602_v28 }
 0x4d7   :  { %v381_v35 = vpop.f32.mrf.mxu1 }
 0x4df   :  { %v383_v37 = vpop.f32.mrf.mxu1 }
 0x4e0   :  { %v386_v38 = vpack.c.bf16 %v383_v37, %v381_v35 }
 0x4e1   :  { %v469_v30 = vpop.f32.mrf.mxu0 }
 0x4e2   :  { %v470_v39 = vadd.f32 %v1291_v36, %v469_v30  ;;  %1191 = vmatmul.msk.bf16.vlgmr.msra.gmra.mxu3 %vm184_vm1, %v386_v38 }
 0x4e4   :  { %v474_v40 = vsel %vm205_vm2, %v470_v39, -inf }
 0x4e5   :  { %475 = vmax.xlane.f32.xlu1 %v474_v40 }
 0x4e9   :  { %v471_v34 = vpop.f32.mrf.mxu0 }
 0x4ea   :  { %v472_v28 = vadd.f32 %v1291_v36, %v471_v34 }
 0x4ec   :  { %v477_v47 = vsel %vm205_vm2, %v472_v28, -inf }
 0x4f2   :  { %1204 = vmatmul.msk.bf16.vlgmr.msrb.gmra.mxu3 %vm184_vm1, %v552_v31 }
 0x558   :  { %v476_v48 = vpop.xlane.xlu1 %475 }
 0x559   :  { %v480_v51 = vsub.f32 %v470_v39, %v476_v48 }
 0x55b   :  { %v482_v54 = vmul.f32 1.442695, %v480_v51 }
 0x565   :  { %v411_v41 = vpop.f32.mrf.mxu3 }
 0x566   :  { %v441_v2 = vadd.f32 %v440_v53, %v411_v41 }
 0x568   :  { %v693_v9 = vadd.f32 %v1643_v3, %v441_v2 }
 0x56a   :  { %v1668_v17 = vadd.f32 %v693_v9, %v55_v12 }
 0x56c   :  { %v703_v19 = vsel %vm123_vm0, %v1668_v17, 0.0 }
 0x56d   :  { %v413_v42 = vpop.f32.mrf.mxu3 }
 0x56e   :  { %v443_v59 = vadd.f32 %v442_v1, %v413_v42 }
 0x570   :  { %v694_v13 = vadd.f32 %v1643_v3, %v443_v59 }
 0x572   :  { %v698_v18 = vadd.f32 %v694_v13, %v56_v15 }
 0x574   :  { %v706_v20 = vsel %vm123_vm0, %v698_v18, 0.0 }
 0x575   :  { %v570_v43 = vpop.f32.mrf.mxu3 }
 0x576   :  { %v571_v44 = vadd.f32 %v1291_v36, %v570_v43 }
 0x578   :  { %v575_v45 = vsel %vm205_vm2, %v571_v44, -inf }
 0x579   :  { %576 = vmax.xlane.f32.xlu0 %v575_v45 }
 0x57d   :  { %v572_v16 = vpop.f32.mrf.mxu3 }
 0x57e   :  { %v573_v33 = vadd.f32 %v1291_v36, %v572_v16 }
 0x580   :  { %v578_v46 = vsel %vm205_vm2, %v573_v33, -inf }
 0x581   :  { %579 = vmax.xlane.f32.xlu2 %v578_v46  ;;  %478 = vmax.xlane.f32.xlu0 %v477_v47 }
 0x5ec   :  { %v577_v49 = vpop.xlane.xlu0 %576 }
 0x5ed   :  { %v581_v50 = vsub.f32 %v571_v44, %v577_v49 }
 0x5ef   :  { %v583_v52 = vmul.f32 1.442695, %v581_v50 }
 0x5f1   :  { %1315 = vpow2.f32 %v583_v52 }
 0x5f2   :  { %1317 = vpow2.f32 %v482_v54 }
 0x5f4   :  { %v580_v56 = vpop.xlane.xlu2 %579  ;;  %v479_v57 = vpop.xlane.xlu0 %478 }
 0x5f5   :  { %v582_v58 = vsub.f32 %v573_v33, %v580_v56  ;;  %v481_v60 = vsub.f32 %v472_v28, %v479_v57 }
 0x5f7   :  { %v1636_v61 = vpop.eup %1315  ;;  %v585_v62 = vmul.f32 1.442695, %v582_v58  ;;  %v484_v63 = vmul.f32 1.442695, %v481_v60 }
 0x5f8   :  { %v587_v0 = vsel %vm205_vm2, %v1636_v61, 0.0  ;;  %v1645_v4 = vpop.eup %1317 }
 0x5f9   :  { %1319 = vpow2.f32 %v585_v62  ;;  %588 = vadd.xlane.f32.xlu2 %v587_v0  ;;  %v486_v11 = vsel %vm205_vm2, %v1645_v4, 0.0 }
 0x5fa   :  { %1321 = vpow2.f32 %v484_v63 }
 0x5fb   :  { %1323 = vrcp.f32 %v1386_v21 }
 0x5ff   :  { %v1655_v7 = vpop.eup %1319 }
 0x600   :  { %v1657_v8 = vpop.eup %1321  ;;  %v590_v10 = vsel %vm205_vm2, %v1655_v7, 0.0 }
 0x601   :  { %591 = vadd.xlane.f32.xlu0 %v590_v10  ;;  %487 = vadd.xlane.f32.xlu2 %v486_v11  ;;  %v489_v14 = vsel %vm205_vm2, %v1657_v8, 0.0  ;;  %v1324_v23 = vpop.eup %1323 }
 0x602   :  { %490 = vadd.xlane.f32.xlu1 %v489_v14  ;;  %v716_v24 = vmul.f32 64.0, %v1324_v23  ;;  %vm720_vm9 = vweird.f32 %v1324_v23 }
 0x604   :  { %v717_v55 = vsub.f32 1.0, %v716_v24 }
 0x606   :  { %v718_v27 = vmul.f32 %v1324_v23, %v717_v55 }
 0x609   :  { %704 = vadd.xlane.f32.xlu2 %v703_v19 }
 0x60a   :  { %707 = vadd.xlane.f32.xlu1 %v706_v20 }
 0x615   :  { %634 = vrot.lane.b32.xlu0 %v1615_v22, %s1384_s2  ;;  %v719_v22 = vadd.f32 %v1324_v23, %v718_v27 }
 0x617   :  { %v1678_v42 = vsel %vm720_vm9, %v1324_v23, %v719_v22 }
 0x66c   :  { %v589_v25 = vpop.xlane.xlu2 %588 }
 0x66d   :  { %1325 = vrcp.f32 %v589_v25  ;;  %v602_v38 = vand.u32 2147483647, %v589_v25  ;;  %v604_v30 = vand.u32 2147483648, %v589_v25  ;;  %vm598_vm10 = vweird.f32 %v589_v25 }
 0x66f   :  { %vm603_vm12 = vcmp.eq.f32.partialorder %v602_v38, 8.507059e+37  ;;  %v605_v41 = vor.u32 1.1754944e-38, %v604_v30 }
 0x673   :  { %v1326_v26 = vpop.eup %1325 }
 0x674   :  { %v594_v29 = vmul.f32 %v1326_v26, %v589_v25  ;;  %v488_v32 = vpop.xlane.xlu2 %487  ;;  %v1675_v35 = vpop.xlane.xlu0 %591  ;;  %vm599_vm8 = vweird.f32 %v1326_v26 }
 0x675   :  { %1327 = vrcp.f32 %v488_v32  ;;  %v491_v36 = vpop.xlane.xlu1 %490  ;;  %vm600_vm11 = vmor %vm598_vm10, %vm599_vm8  ;;  %vm497_vm13 = vweird.f32 %v488_v32  ;;  %v501_v34 = vand.u32 2147483647, %v488_v32  ;;  %v503_v33 = vand.u32 2147483648, %v488_v32 }
 0x676   :  { %v595_v37 = vsub.f32 1.0, %v594_v29  ;;  %1329 = vrcp.f32 %v491_v36  ;;  %vm512_vm14 = vweird.f32 %v491_v36  ;;  %v516_v49 = vand.u32 2147483647, %v491_v36 }
 0x677   :  { %1331 = vrcp.f32 %v1675_v35  ;;  %v518_v53 = vand.u32 2147483648, %v491_v36  ;;  %v617_v54 = vand.u32 2147483647, %v1675_v35  ;;  %v619_v63 = vand.u32 2147483648, %v1675_v35 }
 0x678   :  { %v596_v39 = vmul.f32 %v1326_v26, %v595_v37  ;;  %vm502_vm6 = vcmp.eq.f32.partialorder %v501_v34, 8.507059e+37  ;;  %vm613_vm8 = vweird.f32 %v1675_v35  ;;  %vm517_vm10 = vcmp.eq.f32.partialorder %v516_v49, 8.507059e+37 }
 0x679   :  { %v519_v10 = vor.u32 1.1754944e-38, %v518_v53  ;;  %v620_v15 = vor.u32 1.1754944e-38, %v619_v63  ;;  %v1273_v63 = vld [vmem:[%s1878_s8 + $0x8] sm:$0xff] }
 0x67a   :  { %v597_v40 = vadd.f32 %v1326_v26, %v596_v39 }
 0x67b   :  { %v1328_v31 = vpop.eup %1327 }
 0x67c   :  { %v1330_v43 = vpop.eup %1329  ;;  %v601_v44 = vsel %vm600_vm11, %v1326_v26, %v597_v40  ;;  %v493_v45 = vmul.f32 %v1328_v31, %v488_v32  ;;  %vm498_vm15 = vweird.f32 %v1328_v31 }
 0x67d   :  { %v1332_v28 = vpop.eup %1331  ;;  %v606_v16 = vsel %vm603_vm12, %v605_v41, %v601_v44  ;;  %v508_v46 = vmul.f32 %v1330_v43, %v491_v36  ;;  %v708_v47 = vpop.xlane.xlu1 %707  ;;  %vm513_vm3 = vweird.f32 %v1330_v43  ;;  %vm499_vm5 = vmor %vm497_vm13, %vm498_vm15  ;;  %vm618_vm12 = vcmp.eq.f32.partialorder %v617_v54, 8.507059e+37 }
 0x67e   :  { %v494_v48 = vsub.f32 1.0, %v493_v45  ;;  %v609_v50 = vmul.f32 %v1332_v28, %v1675_v35  ;;  %v723_v51 = vmul.f32 %v1678_v42, %v708_v47  ;;  %v607_v56 = vmul.f32 %v1636_v61, %v606_v16  ;;  %vm514_vm9 = vmor %vm512_vm14, %vm513_vm3  ;;  %v54_v16 = vld [vmem:[%s1870_s0 + $0xc] sm:$0xf] }
 0x67f   :  { %v509_v52 = vsub.f32 1.0, %v508_v46  ;;  %vm614_vm4 = vweird.f32 %v1332_v28  ;;  %v504_v61 = vor.u32 1.1754944e-38, %v503_v33  ;;  %v57_v44 = vunpack.c.h.bf16 %v1653_v6 }
 0x680   :  { %v495_v57 = vmul.f32 %v1328_v31, %v494_v48  ;;  %v610_v58 = vsub.f32 1.0, %v609_v50  ;;  %v1684_v60 = vsub.f32 %v698_v18, %v723_v51  ;;  %v623_v0 = vpack.c.bf16 %v607_v56, %v607_v56  ;;  %vm615_vm11 = vmor %vm613_vm8, %vm614_vm4 }
 0x681   :  { %v510_v62 = vmul.f32 %v1330_v43, %v509_v52  ;;  %v58_v50 = vunpack.c.l.bf16 %v54_v16 }
 0x682   :  { %v496_v1 = vadd.f32 %v1328_v31, %v495_v57  ;;  %v611_v2 = vmul.f32 %v1332_v28, %v610_v58  ;;  %v731_v59 = vmul.f32 %v1684_v60, %v1684_v60  ;;  %626 = vst.msk [vmem:[#allocation2 + $0x18] sm:$0xf] %vm256_vm7, %v623_v0  ;;  %v1275_v58 = vld [vmem:[%s1878_s8 + $0x18] sm:$0xff] }
 0x683   :  { %v511_v5 = vadd.f32 %v1330_v43, %v510_v62  ;;  %860 = vmatpush.bf16.msra.mxu3 %v1275_v58  ;;  %v1280_v58 = vld [vmem:[%s1880_s10 + $0x20] sm:$0xff] }
 0x684   :  { %v500_v9 = vsel %vm499_vm5, %v1328_v31, %v496_v1  ;;  %v612_v11 = vadd.f32 %v1332_v28, %v611_v2  ;;  %v737_v12 = vsel %vm123_vm0, %v731_v59, 0.0  ;;  %v705_v31 = vpop.xlane.xlu2 %704  ;;  %v1272_v59 = vld [vmem:[%s1878_s8] sm:$0xff] }
 0x685   :  { %v505_v13 = vsel %vm502_vm6, %v504_v61, %v500_v9  ;;  %v515_v14 = vsel %vm514_vm9, %v1330_v43, %v511_v5  ;;  %738 = vadd.xlane.f32.xlu0 %v737_v12  ;;  %v722_v45 = vmul.f32 %v1678_v42, %v705_v31 }
 0x686   :  { %v506_v18 = vmul.f32 %v1645_v4, %v505_v13  ;;  %v520_v19 = vsel %vm517_vm10, %v519_v10, %v515_v14  ;;  %v616_v20 = vsel %vm615_vm11, %v1332_v28, %v612_v11  ;;  %v630_v4 = vunpack.c.l.b16 %v623_v0 }
 0x687   :  { %v521_v21 = vmul.f32 %v1657_v8, %v520_v19  ;;  %v621_v23 = vsel %vm618_vm12, %v620_v15, %v616_v20  ;;  %v635_v24 = vpop.permute.xlu0 %634  ;;  %v1712_v33 = vsub.f32 %v1668_v17, %v722_v45 }
 0x688   :  { %v522_v25 = vpack.c.bf16 %v506_v18, %v506_v18  ;;  %647 = vmatpush.bf16.msrb.mxu2 %v635_v24  ;;  %v622_v55 = vmul.f32 %v1655_v7, %v621_v23 }
 0x689   :  { %v523_v26 = vpack.c.bf16 %v521_v21, %v521_v21  ;;  %v730_v51 = vmul.f32 %v1712_v33, %v1712_v33 }
 0x68a   :  { %525 = vst.msk [vmem:[#allocation2 + $0x10] sm:$0xf] %vm256_vm7, %v522_v25  ;;  %v530_v27 = vunpack.c.l.b16 %v522_v25  ;;  %v624_v29 = vpack.c.bf16 %v622_v55, %v622_v55 }
 0x68b   :  { %526 = vst.msk [vmem:[#allocation2 + $0x14] sm:$0xf] %vm256_vm7, %v523_v26  ;;  %v531_v32 = vunpack.c.l.b16 %v523_v26  ;;  %v734_v54 = vsel %vm123_vm0, %v730_v51, 0.0 }
 0x68c   :  { %627 = vst.msk [vmem:[#allocation2 + $0x1c] sm:$0xf] %vm256_vm7, %v624_v29  ;;  %v631_v35 = vunpack.c.l.b16 %v624_v29 }
 0x68d   :  { %v532_v36 = vpack.c.b16 %v531_v32, %v530_v27 }
 0x68e   :  { %v632_v8 = vpack.c.b16 %v631_v35, %v630_v4  ;;  %v1293_v4 = vld [vmem:[%s1876_s6] ss:$0 sm:$0xff] }
 0x68f   :  { %1203 = vmatmul.msk.bf16.vlgmr.msra.gmra.mxu1 %vm205_vm2, %v532_v36 }
 0x690   :  { %1205 = vmatmul.msk.bf16.vlgmr.msrb.gmra.mxu2 %vm205_vm2, %v632_v8 }
 0x6f8   :  { %v739_v17 = vpop.xlane.xlu0 %738 }
 0x6f9   :  { %v747_v56 = vmul.f32 %v739_v17, %v1678_v42 }
 0x6fb   :  { %v751_v57 = vadd.f32 1e-12, %v747_v56 }
 0x6fd   :  { %1333 = vrsqrt.f32 %v751_v57  ;;  %vm770_vm2 = vweird.f32 %v751_v57 }
 0x703   :  { %v1334_v0 = vpop.eup %1333 }
 0x704   :  { %v765_v61 = vmul.f32 %v1334_v0, %v751_v57 }
 0x706   :  { %v766_v10 = vmul.f32 %v1334_v0, %v765_v61  ;;  %v1278_v61 = vld [vmem:[%s1880_s10 + $0x10] sm:$0xff] }
 0x708   :  { %v767_v19 = vmul.f32 0.5, %v766_v10  ;;  %v1276_v10 = vld [vmem:[%s1880_s10] sm:$0xff] }
 0x70a   :  { %v768_v23 = vsub.f32 1.5, %v767_v19 }
 0x70c   :  { %v545_v37 = vpop.f32.mrf.mxu1  ;;  %v769_v25 = vmul.f32 %v1334_v0, %v768_v23 }
 0x713   :  { %v649_v7 = vpop.f32.mrf.mxu2 }
 0x714   :  { %v547_v38 = vpop.f32.mrf.mxu1 }
 0x715   :  { %v550_v30 = vpack.c.bf16 %v547_v38, %v545_v37  ;;  %v1294_v37 = vld [vmem:[%s1877_s7] ss:$0 sm:$0xff] }
 0x717   :  { %1207 = vmatmul.msk.bf16.vlgmr.msrb.gmra.mxu1 %vm184_vm1, %v550_v30 }
 0x71b   :  { %v651_v22 = vpop.f32.mrf.mxu2 }
 0x71c   :  { %v654_v39 = vpack.c.bf16 %v651_v22, %v649_v7 }
 0x71e   :  { %1206 = vmatmul.msk.bf16.vlgmr.msrb.gmra.mxu0 %vm184_vm1, %v654_v39  ;;  %vm771_vm1 = vweird.f32 %v1334_v0 }
 0x71f   :  { %vm772_vm7 = vmor %vm770_vm2, %vm771_vm1  ;;  %vm1108_vm1 = vcmask 519168  }
 0x720   :  { %v773_v27 = vsel %vm772_vm7, %v1334_v0, %v769_v25  ;;  %v1279_v0 = vld [vmem:[%s1880_s10 + $0x18] sm:$0xff] }
 0x721   :  { %v795_v35 = vmul.f32 %v773_v27, %v1684_v60 }
 0x723   :  { %v802_v7 = vmul.f32 %v1293_v4, %v795_v35 }
 0x725   :  { %v1754_v22 = vadd.f32 %v1294_v37, %v802_v7 }
 0x794   :  { %v684_v40 = vpop.f32.mrf.mxu1 }
 0x79b   :  { %v667_v41 = vpop.f32.mrf.mxu0 }
 0x79c   :  { %v685_v43 = vadd.f32 %v684_v40, %v667_v41  ;;  %v686_v47 = vpop.f32.mrf.mxu1 }
 0x79e   :  { %v695_v34 = vadd.f32 %v1643_v3, %v685_v43 }
 0x7a0   :  { %v699_v28 = vadd.f32 %v695_v34, %v57_v44 }
 0x7a2   :  { %v709_v46 = vsel %vm123_vm0, %v699_v28, 0.0 }
 0x7a3   :  { %v669_v48 = vpop.f32.mrf.mxu0  ;;  %710 = vadd.xlane.f32.xlu2 %v709_v46  ;;  %v1283_v46 = vld [vmem:[%s1880_s10 + $0x38] sm:$0xff] }
 0x7a4   :  { %v687_v49 = vadd.f32 %v686_v47, %v669_v48  ;;  %977 = vmatpush.bf16.msra.mxu2 %v1283_v46 }
 0x7a6   :  { %v696_v6 = vadd.f32 %v1643_v3, %v687_v49  ;;  %v1274_v3 = vld [vmem:[%s1878_s8 + $0x10] sm:$0xff] }
 0x7a7   :  { %861 = vmatpush.bf16.msra.mxu3 %v1274_v3 }
 0x7a8   :  { %v700_v52 = vadd.f32 %v696_v6, %v58_v50  ;;  %v1282_v6 = vld [vmem:[%s1880_s10 + $0x30] sm:$0xff] }
 0x7a9   :  { %978 = vmatpush.bf16.msra.mxu2 %v1282_v6 }
 0x7aa   :  { %v712_v53 = vsel %vm123_vm0, %v700_v52, 0.0 }
 0x7ab   :  { %713 = vadd.xlane.f32.xlu1 %v712_v53  ;;  %735 = vadd.xlane.f32.xlu2 %v734_v54  ;;  %v1281_v54 = vld [vmem:[%s1880_s10 + $0x28] sm:$0xff] }
 0x7ac   :  { %862 = vmatpush.bf16.msra.mxu3 %v1273_v63 }
 0x7ad   :  { %979 = vmatpush.bf16.msra.mxu2 %v1281_v54 }
 0x7b0   :  { %863 = vmatpush.bf16.msra.mxu3 %v1272_v59 }
 0x7b1   :  { %980 = vmatpush.bf16.msra.mxu2 %v1280_v58 }
 0x7b5   :  { %981 = vmatpush.bf16.msra.mxu2 %v1279_v0 }
 0x7b9   :  { %982 = vmatpush.bf16.msra.mxu2 %v1278_v61 }
 0x816   :  { %v711_v62 = vpop.xlane.xlu2 %710 }
 0x817   :  { %v724_v1 = vmul.f32 %v1678_v42, %v711_v62 }
 0x819   :  { %v1731_v2 = vsub.f32 %v699_v28, %v724_v1 }
 0x81b   :  { %v732_v5 = vmul.f32 %v1731_v2, %v1731_v2 }
 0x81d   :  { %v740_v9 = vsel %vm123_vm0, %v732_v5, 0.0 }
 0x81e   :  { %v714_v11 = vpop.xlane.xlu1 %713  ;;  %741 = vadd.xlane.f32.xlu1 %v740_v9  ;;  %v736_v12 = vpop.xlane.xlu2 %735  ;;  %v1277_v9 = vld [vmem:[%s1880_s10 + $0x8] sm:$0xff] }
 0x81f   :  { %v725_v13 = vmul.f32 %v1678_v42, %v714_v11  ;;  %v746_v14 = vmul.f32 %v736_v12, %v1678_v42  ;;  %983 = vmatpush.bf16.msra.mxu2 %v1277_v9  ;;  %v1295_v11 = vld [vmem:[%s1879_s9] ss:$0 sm:$0xff] }
 0x821   :  { %v1741_v15 = vsub.f32 %v700_v52, %v725_v13  ;;  %v750_v18 = vadd.f32 1e-12, %v746_v14 }
 0x823   :  { %1335 = vrsqrt.f32 %v750_v18  ;;  %v733_v20 = vmul.f32 %v1741_v15, %v1741_v15  ;;  %vm760_vm14 = vweird.f32 %v750_v18  ;;  %984 = vmatpush.bf16.msra.mxu2 %v1276_v10 }
 0x825   :  { %v743_v21 = vsel %vm123_vm0, %v733_v20, 0.0 }
 0x826   :  { %744 = vadd.xlane.f32.xlu2 %v743_v21 }
 0x829   :  { %v1336_v24 = vpop.eup %1335 }
 0x82a   :  { %v755_v55 = vmul.f32 %v1336_v24, %v750_v18  ;;  %vm761_vm13 = vweird.f32 %v1336_v24 }
 0x82b   :  { %vm762_vm15 = vmor %vm760_vm14, %vm761_vm13 }
 0x82c   :  { %v756_v26 = vmul.f32 %v1336_v24, %v755_v55 }
 0x82e   :  { %v757_v29 = vmul.f32 0.5, %v756_v26 }
 0x830   :  { %v758_v32 = vsub.f32 1.5, %v757_v29 }
 0x832   :  { %v759_v36 = vmul.f32 %v1336_v24, %v758_v32 }
 0x834   :  { %v763_v8 = vsel %vm762_vm15, %v1336_v24, %v759_v36 }
 0x835   :  { %v794_v38 = vmul.f32 %v763_v8, %v1712_v33 }
 0x837   :  { %v801_v30 = vmul.f32 %v1293_v4, %v794_v38 }
 0x839   :  { %v1756_v39 = vadd.f32 %v1294_v37, %v801_v30 }
 0x83b   :  { %v812_v40 = vpack.c.bf16 %v1754_v22, %v1756_v39 }
 0x83d   :  { %1224 = vmatmul.msk.bf16.vlgmr.msra.gmra.mxu3 %vm123_vm0, %v812_v40 }
 0x891   :  { %v742_v60 = vpop.xlane.xlu1 %741 }
 0x892   :  { %v748_v31 = vmul.f32 %v742_v60, %v1678_v42 }
 0x894   :  { %v752_v41 = vadd.f32 1e-12, %v748_v31 }
 0x896   :  { %1337 = vrsqrt.f32 %v752_v41  ;;  %vm780_vm4 = vweird.f32 %v752_v41 }
 0x899   :  { %v745_v43 = vpop.xlane.xlu2 %744 }
 0x89a   :  { %v749_v44 = vmul.f32 %v745_v43, %v1678_v42 }
 0x89c   :  { %v1338_v45 = vpop.eup %1337  ;;  %v753_v34 = vadd.f32 1e-12, %v749_v44 }
 0x89d   :  { %v775_v28 = vmul.f32 %v1338_v45, %v752_v41  ;;  %vm781_vm3 = vweird.f32 %v1338_v45 }
 0x89e   :  { %1339 = vrsqrt.f32 %v753_v34  ;;  %vm782_vm5 = vmor %vm780_vm4, %vm781_vm3  ;;  %vm790_vm8 = vweird.f32 %v753_v34 }
 0x89f   :  { %v776_v16 = vmul.f32 %v1338_v45, %v775_v28 }
 0x8a1   :  { %v777_v33 = vmul.f32 0.5, %v776_v16 }
 0x8a3   :  { %v778_v47 = vsub.f32 1.5, %v777_v33 }
 0x8a4   :  { %v1340_v48 = vpop.eup %1339 }
 0x8a5   :  { %v779_v49 = vmul.f32 %v1338_v45, %v778_v47  ;;  %v785_v50 = vmul.f32 %v1340_v48, %v753_v34  ;;  %vm791_vm6 = vweird.f32 %v1340_v48 }
 0x8a6   :  { %vm792_vm9 = vmor %vm790_vm8, %vm791_vm6 }
 0x8a7   :  { %v786_v51 = vmul.f32 %v1340_v48, %v785_v50  ;;  %v783_v52 = vsel %vm782_vm5, %v1338_v45, %v779_v49 }
 0x8a8   :  { %v796_v56 = vmul.f32 %v783_v52, %v1731_v2  ;;  %v1296_v52 = vld [vmem:[%s1881_s11] ss:$0 sm:$0xff] }
 0x8a9   :  { %v787_v53 = vmul.f32 0.5, %v786_v51 }
 0x8aa   :  { %v803_v63 = vmul.f32 %v1293_v4, %v796_v56 }
 0x8ab   :  { %v788_v17 = vsub.f32 1.5, %v787_v53 }
 0x8ac   :  { %v1780_v59 = vadd.f32 %v1294_v37, %v803_v63 }
 0x8ad   :  { %v789_v57 = vmul.f32 %v1340_v48, %v788_v17 }
 0x8af   :  { %v793_v3 = vsel %vm792_vm9, %v1340_v48, %v789_v57 }
 0x8b0   :  { %v797_v62 = vmul.f32 %v793_v3, %v1741_v15 }
 0x8b2   :  { %v804_v1 = vmul.f32 %v1293_v4, %v797_v62 }
 0x8b4   :  { %v1782_v2 = vadd.f32 %v1294_v37, %v804_v1 }
 0x8b6   :  { %v813_v5 = vpack.c.bf16 %v1782_v2, %v1780_v59 }
 0x8b8   :  { %1225 = vmatmul.msk.bf16.gmra.mxu3 %vm123_vm0, %v813_v5 }
 0x8c0   :  { %v865_v12 = vpop.f32.mrf.mxu3 }
 0x8c1   :  { %v866_v13 = vadd.f32 %v1295_v11, %v865_v12 }
 0x8c3   :  { %v875_v14 = vmul.f32 %v866_v13, %v866_v13  ;;  %v891_v32 = vmul.f32 0.5, %v866_v13 }
 0x8c5   :  { %v879_v15 = vmul.f32 0.035677407, %v875_v14 }
 0x8c7   :  { %v883_v18 = vadd.f32 0.7978846, %v879_v15 }
 0x8c8   :  { %v867_v19 = vpop.f32.mrf.mxu3 }
 0x8c9   :  { %v868_v20 = vadd.f32 %v1295_v11, %v867_v19  ;;  %v887_v21 = vmul.f32 %v883_v18, %v866_v13 }
 0x8cb   :  { %v876_v23 = vmul.f32 %v868_v20, %v868_v20  ;;  %1341 = vtanh.f32 %v887_v21  ;;  %v892_v4 = vmul.f32 0.5, %v868_v20 }
 0x8cd   :  { %v880_v24 = vmul.f32 0.035677407, %v876_v23 }
 0x8cf   :  { %v884_v25 = vadd.f32 0.7978846, %v880_v24 }
 0x8d1   :  { %v888_v55 = vmul.f32 %v884_v25, %v868_v20  ;;  %v1342_v26 = vpop.eup %1341 }
 0x8d2   :  { %v899_v27 = vadd.f32 1.0, %v1342_v26 }
 0x8d3   :  { %1343 = vtanh.f32 %v888_v55 }
 0x8d4   :  { %v903_v36 = vmul.f32 %v899_v27, %v891_v32 }
 0x8d9   :  { %v1344_v29 = vpop.eup %1343 }
 0x8da   :  { %v900_v35 = vadd.f32 1.0, %v1344_v29 }
 0x8dc   :  { %v904_v8 = vmul.f32 %v900_v35, %v892_v4 }
 0x8de   :  { %v907_v37 = vpack.c.bf16 %v904_v8, %v903_v36 }
 0x8e0   :  { %985 = vmatmul.bf16.vlgmr.msra.gmra.mxu2 %v907_v37 }
 0x93b   :  { %v870_v7 = vpop.f32.mrf.mxu3 }
 0x93c   :  { %v871_v38 = vadd.f32 %v1295_v11, %v870_v7 }
 0x93e   :  { %v877_v30 = vmul.f32 %v871_v38, %v871_v38  ;;  %v893_v47 = vmul.f32 0.5, %v871_v38 }
 0x940   :  { %v881_v40 = vmul.f32 0.035677407, %v877_v30 }
 0x942   :  { %v885_v60 = vadd.f32 0.7978846, %v881_v40 }
 0x943   :  { %v872_v31 = vpop.f32.mrf.mxu3 }
 0x944   :  { %v873_v41 = vadd.f32 %v1295_v11, %v872_v31  ;;  %v889_v43 = vmul.f32 %v885_v60, %v871_v38 }
 0x946   :  { %v878_v44 = vmul.f32 %v873_v41, %v873_v41  ;;  %1345 = vtanh.f32 %v889_v43  ;;  %v894_v48 = vmul.f32 0.5, %v873_v41 }
 0x948   :  { %v882_v45 = vmul.f32 0.035677407, %v878_v44 }
 0x94a   :  { %v886_v34 = vadd.f32 0.7978846, %v882_v45  ;;  %v1835_v45 = vld [vmem:[%s1882_s12] ss:$0 sm:$0xff]  ;;  %s1121_s12 = sshll.u32 %s1885_s15, 4  ;;  %s1122_s12 = int_to_ptr.hbm [resolvable:$true] %s1121_s12 }
 0x94c   :  { %v890_v28 = vmul.f32 %v886_v34, %v873_v41  ;;  %v1346_v16 = vpop.eup %1345 }
 0x94d   :  { %v901_v33 = vadd.f32 1.0, %v1346_v16  ;;  %v1298_v16 = vld [vmem:[%s1883_s13] ss:$0 sm:$0xff]  ;;  %s1388_s13 = smov 4  }
 0x94e   :  { %1347 = vtanh.f32 %v890_v28  ;;  %1127 = dma.vmem_to_hbm [thread:$0]  %s1120_s4, 512, %s1122_s12, [#allocation3], %s1383_s25, %s1383_s25, %s1388_s13  }
 0x94f   :  { %v905_v50 = vmul.f32 %v901_v33, %v893_v47 }
 0x954   :  { %v1348_v46 = vpop.eup %1347 }
 0x955   :  { %v902_v49 = vadd.f32 1.0, %v1348_v46 }
 0x957   :  { %v906_v6 = vmul.f32 %v902_v49, %v894_v48 }
 0x959   :  { %v908_v51 = vpack.c.bf16 %v906_v6, %v905_v50 }
 0x95b   :  { %990 = vmatmul.bf16.gmra.mxu2 %v908_v51 }
 0x963   :  { %v986_v53 = vpop.f32.mrf.mxu2 }
 0x964   :  { %v987_v54 = vadd.f32 %v1296_v52, %v986_v53 }
 0x966   :  { %v996_v17 = vadd.f32 %v987_v54, %v1756_v39 }
 0x968   :  { %v1002_v56 = vsel %vm123_vm0, %v996_v17, 0.0 }
 0x969   :  { %1003 = vadd.xlane.f32.xlu1 %v1002_v56 }
 0x96b   :  { %v988_v57 = vpop.f32.mrf.mxu2 }
 0x96c   :  { %v989_v58 = vadd.f32 %v1296_v52, %v988_v57 }
 0x96e   :  { %v997_v3 = vadd.f32 %v989_v58, %v1754_v22 }
 0x970   :  { %v1005_v62 = vsel %vm123_vm0, %v997_v3, 0.0 }
 0x971   :  { %1006 = vadd.xlane.f32.xlu2 %v1005_v62 }
 0x9dc   :  { %v1004_v63 = vpop.xlane.xlu1 %1003 }
 0x9dd   :  { %v1014_v1 = vmul.f32 %v1004_v63, %v1678_v42 }
 0x9de   :  { %v991_v0 = vpop.f32.mrf.mxu2 }
 0x9df   :  { %v992_v61 = vadd.f32 %v1296_v52, %v991_v0  ;;  %v1018_v9 = vsub.f32 %v996_v17, %v1014_v1 }
 0x9e1   :  { %v998_v5 = vadd.f32 %v992_v61, %v1780_v59  ;;  %v1022_v22 = vmul.f32 %v1018_v9, %v1018_v9 }
 0x9e3   :  { %v1008_v39 = vsel %vm123_vm0, %v998_v5, 0.0  ;;  %v1026_v19 = vsel %vm123_vm0, %v1022_v22, 0.0 }
 0x9e4   :  { %1009 = vadd.xlane.f32.xlu1 %v1008_v39  ;;  %v1007_v10 = vpop.xlane.xlu2 %1006 }
 0x9e5   :  { %v1015_v12 = vmul.f32 %v1007_v10, %v1678_v42 }
 0x9e6   :  { %v993_v11 = vpop.f32.mrf.mxu2 }
 0x9e7   :  { %v994_v13 = vadd.f32 %v1296_v52, %v993_v11  ;;  %v1811_v15 = vsub.f32 %v997_v3, %v1015_v12 }
 0x9e9   :  { %v999_v14 = vadd.f32 %v994_v13, %v1782_v2  ;;  %v1023_v59 = vmul.f32 %v1811_v15, %v1811_v15 }
 0x9eb   :  { %v1011_v18 = vsel %vm123_vm0, %v999_v14, 0.0  ;;  %v1029_v20 = vsel %vm123_vm0, %v1023_v59, 0.0 }
 0x9ec   :  { %1012 = vadd.xlane.f32.xlu2 %v1011_v18  ;;  %1027 = vadd.xlane.f32.xlu1 %v1026_v19 }
 0x9f4   :  { %1030 = vadd.xlane.f32.xlu2 %v1029_v20 }
 0xa57   :  { %v1010_v21 = vpop.xlane.xlu1 %1009 }
 0xa58   :  { %v1016_v23 = vmul.f32 %v1010_v21, %v1678_v42 }
 0xa5a   :  { %v1819_v24 = vsub.f32 %v998_v5, %v1016_v23 }
 0xa5c   :  { %v1024_v2 = vmul.f32 %v1819_v24, %v1819_v24 }
 0xa5e   :  { %v1032_v25 = vsel %vm123_vm0, %v1024_v2, 0.0 }
 0xa5f   :  { %1033 = vadd.xlane.f32.xlu1 %v1032_v25  ;;  %v1028_v55 = vpop.xlane.xlu1 %1027  ;;  %v1013_v26 = vpop.xlane.xlu2 %1012 }
 0xa60   :  { %v1038_v27 = vmul.f32 %v1028_v55, %v1678_v42  ;;  %v1017_v29 = vmul.f32 %v1013_v26, %v1678_v42 }
 0xa62   :  { %v1042_v32 = vadd.f32 1e-12, %v1038_v27  ;;  %v1826_v4 = vsub.f32 %v999_v14, %v1017_v29 }
 0xa64   :  { %1349 = vrsqrt.f32 %v1042_v32  ;;  %v1025_v35 = vmul.f32 %v1826_v4, %v1826_v4  ;;  %vm1052_vm11 = vweird.f32 %v1042_v32 }
 0xa66   :  { %v1035_v36 = vsel %vm123_vm0, %v1025_v35, 0.0 }
 0xa67   :  { %1036 = vadd.xlane.f32.xlu2 %v1035_v36  ;;  %v1031_v8 = vpop.xlane.xlu2 %1030 }
 0xa68   :  { %v1039_v37 = vmul.f32 %v1031_v8, %v1678_v42 }
 0xa6a   :  { %v1350_v7 = vpop.eup %1349  ;;  %v1043_v38 = vadd.f32 1e-12, %v1039_v37 }
 0xa6b   :  { %v1047_v30 = vmul.f32 %v1350_v7, %v1042_v32  ;;  %vm1053_vm10 = vweird.f32 %v1350_v7 }
 0xa6c   :  { %1351 = vrsqrt.f32 %v1043_v38  ;;  %vm1054_vm0 = vmor %vm1052_vm11, %vm1053_vm10  ;;  %vm1062_vm2 = vweird.f32 %v1043_v38 }
 0xa6d   :  { %v1048_v40 = vmul.f32 %v1350_v7, %v1047_v30 }
 0xa6f   :  { %v1049_v60 = vmul.f32 0.5, %v1048_v40 }
 0xa71   :  { %v1050_v31 = vsub.f32 1.5, %v1049_v60 }
 0xa72   :  { %v1352_v41 = vpop.eup %1351 }
 0xa73   :  { %v1051_v43 = vmul.f32 %v1350_v7, %v1050_v31  ;;  %v1057_v44 = vmul.f32 %v1352_v41, %v1043_v38  ;;  %vm1063_vm12 = vweird.f32 %v1352_v41 }
 0xa74   :  { %vm1064_vm7 = vmor %vm1062_vm2, %vm1063_vm12 }
 0xa75   :  { %v1055_v34 = vsel %vm1054_vm0, %v1350_v7, %v1051_v43  ;;  %v1058_v28 = vmul.f32 %v1352_v41, %v1057_v44 }
 0xa76   :  { %v1086_v33 = vmul.f32 %v1055_v34, %v1018_v9 }
 0xa77   :  { %v1059_v46 = vmul.f32 0.5, %v1058_v28 }
 0xa78   :  { %v1093_v47 = vmul.f32 %v1835_v45, %v1086_v33 }
 0xa79   :  { %v1060_v48 = vsub.f32 1.5, %v1059_v46 }
 0xa7a   :  { %v1100_v49 = vadd.f32 %v1298_v16, %v1093_v47 }
 0xa7b   :  { %v1061_v50 = vmul.f32 %v1352_v41, %v1060_v48 }
 0xa7c   :  { %v1104_v6 = vpack.c.bf16 %v1100_v49, %v1100_v49 }
 0xa7d   :  { %v1065_v51 = vsel %vm1064_vm7, %v1352_v41, %v1061_v50 }
 0xa7e   :  { %1109 = vst.msk [vmem:[%s1884_s14] sm:$0xf] %vm1108_vm1, %v1104_v6  ;;  %v1087_v52 = vmul.f32 %v1065_v51, %v1811_v15 }
 0xa80   :  { %v1094_v53 = vmul.f32 %v1835_v45, %v1087_v52 }
 0xa82   :  { %v1101_v54 = vadd.f32 %v1298_v16, %v1094_v53 }
 0xa84   :  { %v1105_v17 = vpack.c.bf16 %v1101_v54, %v1101_v54 }
 0xa86   :  { %1110 = vst.msk [vmem:[%s1884_s14 + $0x4] sm:$0xf] %vm1108_vm1, %v1105_v17 }
 0xad2   :  { %v1034_v56 = vpop.xlane.xlu1 %1033 }
 0xad3   :  { %v1040_v57 = vmul.f32 %v1034_v56, %v1678_v42 }
 0xad5   :  { %v1044_v58 = vadd.f32 1e-12, %v1040_v57 }
 0xad7   :  { %1353 = vrsqrt.f32 %v1044_v58  ;;  %vm1072_vm14 = vweird.f32 %v1044_v58 }
 0xada   :  { %v1037_v3 = vpop.xlane.xlu2 %1036 }
 0xadb   :  { %v1041_v62 = vmul.f32 %v1037_v3, %v1678_v42 }
 0xadd   :  { %v1354_v63 = vpop.eup %1353  ;;  %v1045_v0 = vadd.f32 1e-12, %v1041_v62 }
 0xade   :  { %v1067_v1 = vmul.f32 %v1354_v63, %v1044_v58  ;;  %vm1073_vm13 = vweird.f32 %v1354_v63 }
 0xadf   :  { %1355 = vrsqrt.f32 %v1045_v0  ;;  %vm1074_vm15 = vmor %vm1072_vm14, %vm1073_vm13  ;;  %vm1082_vm4 = vweird.f32 %v1045_v0 }
 0xae0   :  { %v1068_v61 = vmul.f32 %v1354_v63, %v1067_v1 }
 0xae2   :  { %v1069_v5 = vmul.f32 0.5, %v1068_v61 }
 0xae4   :  { %v1070_v9 = vsub.f32 1.5, %v1069_v5 }
 0xae5   :  { %v1356_v39 = vpop.eup %1355 }
 0xae6   :  { %v1071_v10 = vmul.f32 %v1354_v63, %v1070_v9  ;;  %v1077_v11 = vmul.f32 %v1356_v39, %v1045_v0  ;;  %vm1083_vm3 = vweird.f32 %v1356_v39 }
 0xae7   :  { %vm1084_vm5 = vmor %vm1082_vm4, %vm1083_vm3 }
 0xae8   :  { %v1075_v12 = vsel %vm1074_vm15, %v1354_v63, %v1071_v10  ;;  %v1078_v13 = vmul.f32 %v1356_v39, %v1077_v11 }
 0xae9   :  { %v1088_v22 = vmul.f32 %v1075_v12, %v1819_v24 }
 0xaea   :  { %v1079_v14 = vmul.f32 0.5, %v1078_v13 }
 0xaeb   :  { %v1095_v42 = vmul.f32 %v1835_v45, %v1088_v22 }
 0xaec   :  { %v1080_v15 = vsub.f32 1.5, %v1079_v14 }
 0xaed   :  { %v1102_v18 = vadd.f32 %v1298_v16, %v1095_v42 }
 0xaee   :  { %v1081_v19 = vmul.f32 %v1356_v39, %v1080_v15 }
 0xaef   :  { %v1106_v59 = vpack.c.bf16 %v1102_v18, %v1102_v18 }
 0xaf0   :  { %v1085_v20 = vsel %vm1084_vm5, %v1356_v39, %v1081_v19 }
 0xaf1   :  { %1111 = vst.msk [vmem:[%s1884_s14 + $0x8] sm:$0xf] %vm1108_vm1, %v1106_v59  ;;  %v1089_v21 = vmul.f32 %v1085_v20, %v1826_v4 }
 0xaf3   :  { %v1096_v23 = vmul.f32 %v1835_v45, %v1089_v21 }
 0xaf5   :  { %v1103_v24 = vadd.f32 %v1298_v16, %v1096_v23 }
 0xaf7   :  { %v1107_v2 = vpack.c.bf16 %v1103_v24, %v1103_v24 }
 0xaf9   :  { %1112 = vst.msk [vmem:[%s1884_s14 + $0xc] sm:$0xf] %vm1108_vm1, %v1107_v2 }
 0xafa   :  { %1381 = dma.done.wait [#allocation3], 512  }
 0xafb   :  { %1382 = vsyncadd [#allocation3], 4294966784 }
 0xafc   :  { %1134 = vsyncpa [#allocation3], 1 }

</bundles_post_ra>
